<compile_context>
chip_gen: v5e
topology: v5e:2x2
jax: 0.10.0
libtpu: 0.0.40
codegen_flags: <defaults>
</compile_context>

<pallas_src>
import functools

import jax
import jax.numpy as jnp
from jax.experimental import pallas as pl
from jax.experimental.pallas import tpu as pltpu

PAD = 8                      # zero-border width == max dilation of the three layers
DILATIONS = (2, 4, 8)
assert PAD >= max(DILATIONS), "zero-border-as-padding requires PAD >= max dilation"


def _tcb_kernel(x_ref, w1_ref, b1_ref, w2_ref, b2_ref, w3_ref, b3_ref,
                o_ref, hbuf_ref, *, H, W, C, slack):
    W_pad = W + 2 * PAD
    canvas = (H + 2 * PAD) * W_pad
    strip = H * W_pad                     # interior row strip (lane-dense length)
    base = slack + PAD * W_pad            # buffer offset of the interior strip

    # Zero the slack wings + top/bottom padding rows of the hidden canvas once.
    # (The strip itself is fully overwritten by each layer's masked store, and both
    # edge regions have identical length `base` by construction.)
    zeros_edge = jnp.zeros((C, base), hbuf_ref.dtype)
    hbuf_ref[:, :base] = zeros_edge
    hbuf_ref[:, base + strip:] = zeros_edge

    # Mask of real (non left/right-padding) columns inside the strip, computed once.
    col = jax.lax.broadcasted_iota(jnp.int32, (1, strip), 1) % W_pad
    interior = (col >= PAD) & (col < PAD + W)

    def conv(src_ref, w_ref, b_ref, dil):
        # 9 accumulated per-tap MXU dots; each tap is a lane-shifted slice of the
        # bf16 canvas, accumulated in f32.  Bias is folded into the accumulator init
        # so there is no separate epilogue pass.
        acc = jnp.broadcast_to(b_ref[...], (C, strip))          # (C,1) f32 -> (C,strip)
        for kh in range(3):
            for kw in range(3):
                t = kh * 3 + kw
                s = (kh - 1) * dil * W_pad + (kw - 1) * dil
                tap = src_ref[:, base + s: base + s + strip]    # bf16 (C, strip)
                acc = acc + jnp.dot(w_ref[:, t * C:(t + 1) * C], tap,
                                    preferred_element_type=jnp.float32)
        return acc

    # Layer 1 (dilation 2): taps read straight from the zero-padded input canvas.
    y = conv(x_ref, w1_ref, b1_ref, DILATIONS[0])
    hbuf_ref[:, base:base + strip] = jnp.where(
        interior, jnp.maximum(y, 0.0), 0.0).astype(hbuf_ref.dtype)

    # Layer 2 (dilation 4).
    y = conv(hbuf_ref, w2_ref, b2_ref, DILATIONS[1])
    hbuf_ref[:, base:base + strip] = jnp.where(
        interior, jnp.maximum(y, 0.0), 0.0).astype(hbuf_ref.dtype)

    # Layer 3 (dilation 8): fuse ReLU + residual into the output store.  The junk
    # left/right padding columns of the strip are cropped by the wrapper.
    y = conv(hbuf_ref, w3_ref, b3_ref, DILATIONS[2])
    o_ref[...] = x_ref[:, base:base + strip].astype(jnp.float32) + jnp.maximum(y, 0.0)


def temporal_context_block(x_nchw, params):
    """x_nchw: (B, C, H, W); params = ((w1,b1),(w2,b2),(w3,b3)), w HWIO (3,3,C,C), b (C,)."""
    x = x_nchw.astype(jnp.float32)
    B, C, H, W = x.shape
    assert C % 8 == 0, "channel count must be a multiple of the sublane tile (8)"
    W_pad = W + 2 * PAD
    canvas = (H + 2 * PAD) * W_pad
    strip = H * W_pad

    # Slack wing so every tap slice stays in-bounds (max shift = PAD*W_pad + PAD),
    # sized so the interior strip starts lane-aligned.
    slack = (-(PAD * W_pad)) % 128
    if slack < PAD:
        slack += 128
    cw = canvas + 2 * slack

    # Canvas layout: channels on sublanes, flattened padded spatial on lanes, plus
    # zero slack wings (removes the in-kernel xbuf copy).  bf16 matmul operands.
    x_canvas = jnp.pad(x, ((0, 0), (0, 0), (PAD, PAD), (PAD, PAD))).reshape(B, C, canvas)
    x_padded = jnp.pad(x_canvas, ((0, 0), (0, 0), (slack, slack))).astype(jnp.bfloat16)

    def prep(w_hwio, b):
        # (3,3,Cin,Cout) -> (Cout, 9*Cin), column order (kh, kw, ci) matching tap order.
        wmat = jnp.transpose(w_hwio, (3, 0, 1, 2)).reshape(C, 9 * C).astype(jnp.bfloat16)
        return wmat, b.reshape(C, 1).astype(jnp.float32)

    (w1, b1), (w2, b2), (w3, b3) = params
    w1m, b1c = prep(w1, b1)
    w2m, b2c = prep(w2, b2)
    w3m, b3c = prep(w3, b3)

    kernel = functools.partial(_tcb_kernel, H=H, W=W, C=C, slack=slack)

    def full_spec(shape):
        return pl.BlockSpec(shape, lambda b: (0,) * len(shape))

    flops = 2 * B * C * (9 * C) * strip * 3
    bytes_accessed = (2 * B * C * cw              # bf16 input canvas
                      + 4 * B * C * strip         # f32 output strip
                      + 3 * (2 * 9 * C * C + 4 * C))

    out_strip = pl.pallas_call(
        kernel,
        out_shape=jax.ShapeDtypeStruct((B, C, strip), jnp.float32),
        grid=(B,),
        in_specs=[pl.BlockSpec((None, C, cw), lambda b: (b, 0, 0)),
                  full_spec((C, 9 * C)), full_spec((C, 1)),
                  full_spec((C, 9 * C)), full_spec((C, 1)),
                  full_spec((C, 9 * C)), full_spec((C, 1))],
        out_specs=pl.BlockSpec((None, C, strip), lambda b: (b, 0, 0)),
        scratch_shapes=[pltpu.VMEM((C, cw), jnp.bfloat16)],    # hidden feature canvas
        compiler_params=pltpu.CompilerParams(
            dimension_semantics=("parallel",),
            vmem_limit_bytes=64 * 1024 * 1024),
        cost_estimate=pl.CostEstimate(flops=flops, transcendentals=0,
                                      bytes_accessed=bytes_accessed),
    )(x_padded, w1m, b1c, w2m, b2c, w3m, b3c)

    # Layout plumbing only: crop the left/right padding columns of the row strip.
    return out_strip.reshape(B, C, H, W_pad)[:, :, :, PAD:PAD + W]


def reference_block(x_nchw, params):
    """Pure-JAX reference (lax.conv_general_dilated) for validation."""
    x = x_nchw.astype(jnp.float32)

    def conv_relu(h, w, b, d):
        y = jax.lax.conv_general_dilated(
            h, w, window_strides=(1, 1), padding=((d, d), (d, d)),
            rhs_dilation=(d, d), dimension_numbers=('NCHW', 'HWIO', 'NCHW'))
        return jnp.maximum(y + b.reshape(1, -1, 1, 1), 0.0)

    (w1, b1), (w2, b2), (w3, b3) = params
    h = conv_relu(x, w1, b1, 2)
    h = conv_relu(h, w2, b2, 4)
    h = conv_relu(h, w3, b3, 8)
    return x + h


def init_params(key, channels):
    params = []
    fan_in = channels * 3 * 3
    scale = 1.0 / jnp.sqrt(jnp.float32(fan_in))
    for i in range(3):
        kw_key, kb_key = jax.random.split(jax.random.fold_in(key, i))
        w = jax.random.normal(kw_key, (3, 3, channels, channels), jnp.float32) * scale
        b = jax.random.normal(kb_key, (channels,), jnp.float32) * scale
        params.append((w, b))
    return tuple(params)


if __name__ == "__main__":
    key = jax.random.PRNGKey(0)
    B, C, H, W = 2, 16, 16, 16   # NCHW, matching the PyTorch module's input convention
    xkey, pkey = jax.random.split(key)
    x = jax.random.normal(xkey, (B, C, H, W), jnp.float32)
    params = init_params(pkey, C)

    out = jax.block_until_ready(temporal_context_block(x, params))
    ref = jax.block_until_ready(reference_block(x, params))

    assert out.shape == (B, C, H, W)
    # bf16 matmul operands (with f32 accumulation) across 3 chained convs -> relaxed
    # tolerance vs. the all-f32 lax.conv reference.
    assert jnp.allclose(out, ref, atol=5e-2, rtol=5e-2), (
        f"max abs err = {jnp.max(jnp.abs(out - ref))}")

    print("KERNEL_OK")
</pallas_src>

<mosaic_0001>
module attributes {stable_mosaic.version = 11 : i64} {
  func.func @_tcb_kernel(%arg0: i32, %arg1: memref<1x16x1280xbf16, #tpu.memory_space<vmem>>, %arg2: memref<16x144xbf16, #tpu.memory_space<vmem>>, %arg3: memref<16x1xf32, #tpu.memory_space<vmem>>, %arg4: memref<16x144xbf16, #tpu.memory_space<vmem>>, %arg5: memref<16x1xf32, #tpu.memory_space<vmem>>, %arg6: memref<16x144xbf16, #tpu.memory_space<vmem>>, %arg7: memref<16x1xf32, #tpu.memory_space<vmem>>, %arg8: memref<1x16x512xf32, #tpu.memory_space<vmem>>, %arg9: memref<16x1280xbf16, #tpu.memory_space<vmem>>) attributes {dimension_semantics = [#tpu.dimension_semantics<parallel>], iteration_bounds = array<i64: 2>, scalar_prefetch = 0 : i64, scratch_operands = 1 : i64, tpu.core_type = #tpu.core_type<tc>, window_params = [{transform_indices = @transform_0, window_bounds = array<i64: 1, 16, 1280>}, {pipeline_mode = #tpu.pipeline_mode<synchronous>, transform_indices = @transform_1, window_bounds = array<i64: 16, 144>}, {pipeline_mode = #tpu.pipeline_mode<synchronous>, transform_indices = @transform_2, window_bounds = array<i64: 16, 1>}, {pipeline_mode = #tpu.pipeline_mode<synchronous>, transform_indices = @transform_3, window_bounds = array<i64: 16, 144>}, {pipeline_mode = #tpu.pipeline_mode<synchronous>, transform_indices = @transform_4, window_bounds = array<i64: 16, 1>}, {pipeline_mode = #tpu.pipeline_mode<synchronous>, transform_indices = @transform_5, window_bounds = array<i64: 16, 144>}, {pipeline_mode = #tpu.pipeline_mode<synchronous>, transform_indices = @transform_6, window_bounds = array<i64: 16, 1>}, {transform_indices = @transform_7, window_bounds = array<i64: 1, 16, 512>}]} {
    %cst = arith.constant 0.000000e+00 : bf16
    %0 = vector.broadcast %cst : bf16 to vector<16x384xbf16>
    %c0 = arith.constant 0 : index
    %c0_0 = arith.constant 0 : index
    %1 = vector.load %arg9[%c0, %c0_0] : memref<16x1280xbf16, #tpu.memory_space<vmem>>, vector<16x384xbf16>
    tpu.vector_store %arg9[%c0, %c0_0], %0 {strides = array<i32>} : memref<16x1280xbf16, #tpu.memory_space<vmem>>, vector<16x384xbf16>,
    %c0_1 = arith.constant 0 : index
    %c896 = arith.constant 896 : index
    %2 = vector.load %arg9[%c0_1, %c896] : memref<16x1280xbf16, #tpu.memory_space<vmem>>, vector<16x384xbf16>
    tpu.vector_store %arg9[%c0_1, %c896], %0 {strides = array<i32>} : memref<16x1280xbf16, #tpu.memory_space<vmem>>, vector<16x384xbf16>,
    %3 = tpu.iota {dimensions = array<i32: 1>} : vector<1x512xi32>
    %c32_i32 = arith.constant 32 : i32
    %c0_i32 = arith.constant 0 : i32
    %4 = arith.cmpi eq, %c32_i32, %c0_i32 : i32
    %c1_i32 = arith.constant 1 : i32
    %5 = arith.select %4, %c1_i32, %c32_i32 : i32
    %6 = vector.broadcast %5 : i32 to vector<1x512xi32>
    %7 = arith.remsi %3, %6 : vector<1x512xi32>
    %c0_i32_2 = arith.constant 0 : i32
    %8 = vector.broadcast %c0_i32_2 : i32 to vector<1x512xi32>
    %9 = arith.cmpi ne, %7, %8 : vector<1x512xi32>
    %c0_i32_3 = arith.constant 0 : i32
    %10 = vector.broadcast %c0_i32_3 : i32 to vector<1x512xi32>
    %11 = arith.cmpi slt, %7, %10 : vector<1x512xi32>
    %c0_i32_4 = arith.constant 0 : i32
    %12 = arith.cmpi slt, %5, %c0_i32_4 : i32
    %13 = vector.broadcast %12 : i1 to vector<1x512xi1>
    %14 = vector.broadcast %13 : vector<1x512xi1> to vector<1x512xi1>
    %15 = arith.xori %11, %14 : vector<1x512xi1>
    %16 = arith.andi %15, %9 : vector<1x512xi1>
    %17 = vector.broadcast %5 : i32 to vector<1x512xi32>
    %18 = arith.addi %7, %17 : vector<1x512xi32>
    %19 = arith.select %16, %18, %7 : vector<1x512xi1>, vector<1x512xi32>
    %c8_i32 = arith.constant 8 : i32
    %20 = vector.broadcast %c8_i32 : i32 to vector<1x512xi32>
    %21 = arith.cmpi sge, %19, %20 : vector<1x512xi32>
    %c24_i32 = arith.constant 24 : i32
    %22 = vector.broadcast %c24_i32 : i32 to vector<1x512xi32>
    %23 = arith.cmpi slt, %19, %22 : vector<1x512xi32>
    %24 = arith.andi %21, %23 : vector<1x512xi1>
    %c0_5 = arith.constant 0 : index
    %c0_6 = arith.constant 0 : index
    %25 = vector.load %arg3[%c0_5, %c0_6] : memref<16x1xf32, #tpu.memory_space<vmem>>, vector<16x1xf32>
    %26 = vector.shape_cast %25 : vector<16x1xf32> to vector<16x1xf32>
    %27 = vector.broadcast %26 : vector<16x1xf32> to vector<16x512xf32>
    %c0_7 = arith.constant 0 : index
    %c0_8 = arith.constant 0 : index
    %c318 = arith.constant 318 : index
    %28 = vector.load %arg1[%c0_7, %c0_8, %c318] : memref<1x16x1280xbf16, #tpu.memory_space<vmem>>, vector<1x16x512xbf16>
    %29 = vector.shape_cast %28 : vector<1x16x512xbf16> to vector<16x512xbf16>
    %c0_9 = arith.constant 0 : index
    %c0_10 = arith.constant 0 : index
    %30 = vector.load %arg2[%c0_9, %c0_10] : memref<16x144xbf16, #tpu.memory_space<vmem>>, vector<16x16xbf16>
    %cst_11 = arith.constant dense<0.000000e+00> : vector<16x512xf32>
    %31 = tpu.matmul %30, %29, %cst_11 {dimension_numbers = #tpu.dot_dimension_numbers<[1], [0], [0], [1], [0, 0, 1, 1], [], []>} : vector<16x16xbf16>, vector<16x512xbf16>, vector<16x512xf32> -> vector<16x512xf32>
    %32 = arith.addf %27, %31 : vector<16x512xf32>
    %c0_12 = arith.constant 0 : index
    %c0_13 = arith.constant 0 : index
    %c320 = arith.constant 320 : index
    %33 = vector.load %arg1[%c0_12, %c0_13, %c320] : memref<1x16x1280xbf16, #tpu.memory_space<vmem>>, vector<1x16x512xbf16>
    %34 = vector.shape_cast %33 : vector<1x16x512xbf16> to vector<16x512xbf16>
    %c0_14 = arith.constant 0 : index
    %c16 = arith.constant 16 : index
    %35 = vector.load %arg2[%c0_14, %c16] : memref<16x144xbf16, #tpu.memory_space<vmem>>, vector<16x16xbf16>
    %cst_15 = arith.constant dense<0.000000e+00> : vector<16x512xf32>
    %36 = tpu.matmul %35, %34, %cst_15 {dimension_numbers = #tpu.dot_dimension_numbers<[1], [0], [0], [1], [0, 0, 1, 1], [], []>} : vector<16x16xbf16>, vector<16x512xbf16>, vector<16x512xf32> -> vector<16x512xf32>
    %37 = arith.addf %32, %36 : vector<16x512xf32>
    %c0_16 = arith.constant 0 : index
    %c0_17 = arith.constant 0 : index
    %c322 = arith.constant 322 : index
    %38 = vector.load %arg1[%c0_16, %c0_17, %c322] : memref<1x16x1280xbf16, #tpu.memory_space<vmem>>, vector<1x16x512xbf16>
    %39 = vector.shape_cast %38 : vector<1x16x512xbf16> to vector<16x512xbf16>
    %c0_18 = arith.constant 0 : index
    %c32 = arith.constant 32 : index
    %40 = vector.load %arg2[%c0_18, %c32] : memref<16x144xbf16, #tpu.memory_space<vmem>>, vector<16x16xbf16>
    %cst_19 = arith.constant dense<0.000000e+00> : vector<16x512xf32>
    %41 = tpu.matmul %40, %39, %cst_19 {dimension_numbers = #tpu.dot_dimension_numbers<[1], [0], [0], [1], [0, 0, 1, 1], [], []>} : vector<16x16xbf16>, vector<16x512xbf16>, vector<16x512xf32> -> vector<16x512xf32>
    %42 = arith.addf %37, %41 : vector<16x512xf32>
    %c0_20 = arith.constant 0 : index
    %c0_21 = arith.constant 0 : index
    %c382 = arith.constant 382 : index
    %43 = vector.load %arg1[%c0_20, %c0_21, %c382] : memref<1x16x1280xbf16, #tpu.memory_space<vmem>>, vector<1x16x512xbf16>
    %44 = vector.shape_cast %43 : vector<1x16x512xbf16> to vector<16x512xbf16>
    %c0_22 = arith.constant 0 : index
    %c48 = arith.constant 48 : index
    %45 = vector.load %arg2[%c0_22, %c48] : memref<16x144xbf16, #tpu.memory_space<vmem>>, vector<16x16xbf16>
    %cst_23 = arith.constant dense<0.000000e+00> : vector<16x512xf32>
    %46 = tpu.matmul %45, %44, %cst_23 {dimension_numbers = #tpu.dot_dimension_numbers<[1], [0], [0], [1], [0, 0, 1, 1], [], []>} : vector<16x16xbf16>, vector<16x512xbf16>, vector<16x512xf32> -> vector<16x512xf32>
    %47 = arith.addf %42, %46 : vector<16x512xf32>
    %c0_24 = arith.constant 0 : index
    %c0_25 = arith.constant 0 : index
    %c384 = arith.constant 384 : index
    %48 = vector.load %arg1[%c0_24, %c0_25, %c384] : memref<1x16x1280xbf16, #tpu.memory_space<vmem>>, vector<1x16x512xbf16>
    %49 = vector.shape_cast %48 : vector<1x16x512xbf16> to vector<16x512xbf16>
    %c0_26 = arith.constant 0 : index
    %c64 = arith.constant 64 : index
    %50 = vector.load %arg2[%c0_26, %c64] : memref<16x144xbf16, #tpu.memory_space<vmem>>, vector<16x16xbf16>
    %cst_27 = arith.constant dense<0.000000e+00> : vector<16x512xf32>
    %51 = tpu.matmul %50, %49, %cst_27 {dimension_numbers = #tpu.dot_dimension_numbers<[1], [0], [0], [1], [0, 0, 1, 1], [], []>} : vector<16x16xbf16>, vector<16x512xbf16>, vector<16x512xf32> -> vector<16x512xf32>
    %52 = arith.addf %47, %51 : vector<16x512xf32>
    %c0_28 = arith.constant 0 : index
    %c0_29 = arith.constant 0 : index
    %c386 = arith.constant 386 : index
    %53 = vector.load %arg1[%c0_28, %c0_29, %c386] : memref<1x16x1280xbf16, #tpu.memory_space<vmem>>, vector<1x16x512xbf16>
    %54 = vector.shape_cast %53 : vector<1x16x512xbf16> to vector<16x512xbf16>
    %c0_30 = arith.constant 0 : index
    %c80 = arith.constant 80 : index
    %55 = vector.load %arg2[%c0_30, %c80] : memref<16x144xbf16, #tpu.memory_space<vmem>>, vector<16x16xbf16>
    %cst_31 = arith.constant dense<0.000000e+00> : vector<16x512xf32>
    %56 = tpu.matmul %55, %54, %cst_31 {dimension_numbers = #tpu.dot_dimension_numbers<[1], [0], [0], [1], [0, 0, 1, 1], [], []>} : vector<16x16xbf16>, vector<16x512xbf16>, vector<16x512xf32> -> vector<16x512xf32>
    %57 = arith.addf %52, %56 : vector<16x512xf32>
    %c0_32 = arith.constant 0 : index
    %c0_33 = arith.constant 0 : index
    %c446 = arith.constant 446 : index
    %58 = vector.load %arg1[%c0_32, %c0_33, %c446] : memref<1x16x1280xbf16, #tpu.memory_space<vmem>>, vector<1x16x512xbf16>
    %59 = vector.shape_cast %58 : vector<1x16x512xbf16> to vector<16x512xbf16>
    %c0_34 = arith.constant 0 : index
    %c96 = arith.constant 96 : index
    %60 = vector.load %arg2[%c0_34, %c96] : memref<16x144xbf16, #tpu.memory_space<vmem>>, vector<16x16xbf16>
    %cst_35 = arith.constant dense<0.000000e+00> : vector<16x512xf32>
    %61 = tpu.matmul %60, %59, %cst_35 {dimension_numbers = #tpu.dot_dimension_numbers<[1], [0], [0], [1], [0, 0, 1, 1], [], []>} : vector<16x16xbf16>, vector<16x512xbf16>, vector<16x512xf32> -> vector<16x512xf32>
    %62 = arith.addf %57, %61 : vector<16x512xf32>
    %c0_36 = arith.constant 0 : index
    %c0_37 = arith.constant 0 : index
    %c448 = arith.constant 448 : index
    %63 = vector.load %arg1[%c0_36, %c0_37, %c448] : memref<1x16x1280xbf16, #tpu.memory_space<vmem>>, vector<1x16x512xbf16>
    %64 = vector.shape_cast %63 : vector<1x16x512xbf16> to vector<16x512xbf16>
    %c0_38 = arith.constant 0 : index
    %c112 = arith.constant 112 : index
    %65 = vector.load %arg2[%c0_38, %c112] : memref<16x144xbf16, #tpu.memory_space<vmem>>, vector<16x16xbf16>
    %cst_39 = arith.constant dense<0.000000e+00> : vector<16x512xf32>
    %66 = tpu.matmul %65, %64, %cst_39 {dimension_numbers = #tpu.dot_dimension_numbers<[1], [0], [0], [1], [0, 0, 1, 1], [], []>} : vector<16x16xbf16>, vector<16x512xbf16>, vector<16x512xf32> -> vector<16x512xf32>
    %67 = arith.addf %62, %66 : vector<16x512xf32>
    %c0_40 = arith.constant 0 : index
    %c0_41 = arith.constant 0 : index
    %c450 = arith.constant 450 : index
    %68 = vector.load %arg1[%c0_40, %c0_41, %c450] : memref<1x16x1280xbf16, #tpu.memory_space<vmem>>, vector<1x16x512xbf16>
    %69 = vector.shape_cast %68 : vector<1x16x512xbf16> to vector<16x512xbf16>
    %c0_42 = arith.constant 0 : index
    %c128 = arith.constant 128 : index
    %70 = vector.load %arg2[%c0_42, %c128] : memref<16x144xbf16, #tpu.memory_space<vmem>>, vector<16x16xbf16>
    %cst_43 = arith.constant dense<0.000000e+00> : vector<16x512xf32>
    %71 = tpu.matmul %70, %69, %cst_43 {dimension_numbers = #tpu.dot_dimension_numbers<[1], [0], [0], [1], [0, 0, 1, 1], [], []>} : vector<16x16xbf16>, vector<16x512xbf16>, vector<16x512xf32> -> vector<16x512xf32>
    %72 = arith.addf %67, %71 : vector<16x512xf32>
    %cst_44 = arith.constant 0.000000e+00 : f32
    %73 = vector.broadcast %cst_44 : f32 to vector<16x512xf32>
    %74 = arith.maximumf %72, %73 : vector<16x512xf32>
    %cst_45 = arith.constant 0.000000e+00 : f32
    %75 = vector.shape_cast %24 : vector<1x512xi1> to vector<1x512xi1>
    %76 = vector.broadcast %75 : vector<1x512xi1> to vector<16x512xi1>
    %77 = vector.broadcast %cst_45 : f32 to vector<16x512xf32>
    %78 = arith.select %76, %74, %77 : vector<16x512xi1>, vector<16x512xf32>
    %79 = arith.truncf %78 : vector<16x512xf32> to vector<16x512xbf16>
    %c0_46 = arith.constant 0 : index
    %c384_47 = arith.constant 384 : index
    %80 = vector.load %arg9[%c0_46, %c384_47] : memref<16x1280xbf16, #tpu.memory_space<vmem>>, vector<16x512xbf16>
    tpu.vector_store %arg9[%c0_46, %c384_47], %79 {strides = array<i32>} : memref<16x1280xbf16, #tpu.memory_space<vmem>>, vector<16x512xbf16>,
    %c0_48 = arith.constant 0 : index
    %c0_49 = arith.constant 0 : index
    %81 = vector.load %arg5[%c0_48, %c0_49] : memref<16x1xf32, #tpu.memory_space<vmem>>, vector<16x1xf32>
    %82 = vector.shape_cast %81 : vector<16x1xf32> to vector<16x1xf32>
    %83 = vector.broadcast %82 : vector<16x1xf32> to vector<16x512xf32>
    %c0_50 = arith.constant 0 : index
    %c252 = arith.constant 252 : index
    %84 = vector.load %arg9[%c0_50, %c252] : memref<16x1280xbf16, #tpu.memory_space<vmem>>, vector<16x512xbf16>
    %c0_51 = arith.constant 0 : index
    %c0_52 = arith.constant 0 : index
    %85 = vector.load %arg4[%c0_51, %c0_52] : memref<16x144xbf16, #tpu.memory_space<vmem>>, vector<16x16xbf16>
    %cst_53 = arith.constant dense<0.000000e+00> : vector<16x512xf32>
    %86 = tpu.matmul %85, %84, %cst_53 {dimension_numbers = #tpu.dot_dimension_numbers<[1], [0], [0], [1], [0, 0, 1, 1], [], []>} : vector<16x16xbf16>, vector<16x512xbf16>, vector<16x512xf32> -> vector<16x512xf32>
    %87 = arith.addf %83, %86 : vector<16x512xf32>
    %c0_54 = arith.constant 0 : index
    %c256 = arith.constant 256 : index
    %88 = vector.load %arg9[%c0_54, %c256] : memref<16x1280xbf16, #tpu.memory_space<vmem>>, vector<16x512xbf16>
    %c0_55 = arith.constant 0 : index
    %c16_56 = arith.constant 16 : index
    %89 = vector.load %arg4[%c0_55, %c16_56] : memref<16x144xbf16, #tpu.memory_space<vmem>>, vector<16x16xbf16>
    %cst_57 = arith.constant dense<0.000000e+00> : vector<16x512xf32>
    %90 = tpu.matmul %89, %88, %cst_57 {dimension_numbers = #tpu.dot_dimension_numbers<[1], [0], [0], [1], [0, 0, 1, 1], [], []>} : vector<16x16xbf16>, vector<16x512xbf16>, vector<16x512xf32> -> vector<16x512xf32>
    %91 = arith.addf %87, %90 : vector<16x512xf32>
    %c0_58 = arith.constant 0 : index
    %c260 = arith.constant 260 : index
    %92 = vector.load %arg9[%c0_58, %c260] : memref<16x1280xbf16, #tpu.memory_space<vmem>>, vector<16x512xbf16>
    %c0_59 = arith.constant 0 : index
    %c32_60 = arith.constant 32 : index
    %93 = vector.load %arg4[%c0_59, %c32_60] : memref<16x144xbf16, #tpu.memory_space<vmem>>, vector<16x16xbf16>
    %cst_61 = arith.constant dense<0.000000e+00> : vector<16x512xf32>
    %94 = tpu.matmul %93, %92, %cst_61 {dimension_numbers = #tpu.dot_dimension_numbers<[1], [0], [0], [1], [0, 0, 1, 1], [], []>} : vector<16x16xbf16>, vector<16x512xbf16>, vector<16x512xf32> -> vector<16x512xf32>
    %95 = arith.addf %91, %94 : vector<16x512xf32>
    %c0_62 = arith.constant 0 : index
    %c380 = arith.constant 380 : index
    %96 = vector.load %arg9[%c0_62, %c380] : memref<16x1280xbf16, #tpu.memory_space<vmem>>, vector<16x512xbf16>
    %c0_63 = arith.constant 0 : index
    %c48_64 = arith.constant 48 : index
    %97 = vector.load %arg4[%c0_63, %c48_64] : memref<16x144xbf16, #tpu.memory_space<vmem>>, vector<16x16xbf16>
    %cst_65 = arith.constant dense<0.000000e+00> : vector<16x512xf32>
    %98 = tpu.matmul %97, %96, %cst_65 {dimension_numbers = #tpu.dot_dimension_numbers<[1], [0], [0], [1], [0, 0, 1, 1], [], []>} : vector<16x16xbf16>, vector<16x512xbf16>, vector<16x512xf32> -> vector<16x512xf32>
    %99 = arith.addf %95, %98 : vector<16x512xf32>
    %c0_66 = arith.constant 0 : index
    %c384_67 = arith.constant 384 : index
    %100 = vector.load %arg9[%c0_66, %c384_67] : memref<16x1280xbf16, #tpu.memory_space<vmem>>, vector<16x512xbf16>
    %c0_68 = arith.constant 0 : index
    %c64_69 = arith.constant 64 : index
    %101 = vector.load %arg4[%c0_68, %c64_69] : memref<16x144xbf16, #tpu.memory_space<vmem>>, vector<16x16xbf16>
    %cst_70 = arith.constant dense<0.000000e+00> : vector<16x512xf32>
    %102 = tpu.matmul %101, %100, %cst_70 {dimension_numbers = #tpu.dot_dimension_numbers<[1], [0], [0], [1], [0, 0, 1, 1], [], []>} : vector<16x16xbf16>, vector<16x512xbf16>, vector<16x512xf32> -> vector<16x512xf32>
    %103 = arith.addf %99, %102 : vector<16x512xf32>
    %c0_71 = arith.constant 0 : index
    %c388 = arith.constant 388 : index
    %104 = vector.load %arg9[%c0_71, %c388] : memref<16x1280xbf16, #tpu.memory_space<vmem>>, vector<16x512xbf16>
    %c0_72 = arith.constant 0 : index
    %c80_73 = arith.constant 80 : index
    %105 = vector.load %arg4[%c0_72, %c80_73] : memref<16x144xbf16, #tpu.memory_space<vmem>>, vector<16x16xbf16>
    %cst_74 = arith.constant dense<0.000000e+00> : vector<16x512xf32>
    %106 = tpu.matmul %105, %104, %cst_74 {dimension_numbers = #tpu.dot_dimension_numbers<[1], [0], [0], [1], [0, 0, 1, 1], [], []>} : vector<16x16xbf16>, vector<16x512xbf16>, vector<16x512xf32> -> vector<16x512xf32>
    %107 = arith.addf %103, %106 : vector<16x512xf32>
    %c0_75 = arith.constant 0 : index
    %c508 = arith.constant 508 : index
    %108 = vector.load %arg9[%c0_75, %c508] : memref<16x1280xbf16, #tpu.memory_space<vmem>>, vector<16x512xbf16>
    %c0_76 = arith.constant 0 : index
    %c96_77 = arith.constant 96 : index
    %109 = vector.load %arg4[%c0_76, %c96_77] : memref<16x144xbf16, #tpu.memory_space<vmem>>, vector<16x16xbf16>
    %cst_78 = arith.constant dense<0.000000e+00> : vector<16x512xf32>
    %110 = tpu.matmul %109, %108, %cst_78 {dimension_numbers = #tpu.dot_dimension_numbers<[1], [0], [0], [1], [0, 0, 1, 1], [], []>} : vector<16x16xbf16>, vector<16x512xbf16>, vector<16x512xf32> -> vector<16x512xf32>
    %111 = arith.addf %107, %110 : vector<16x512xf32>
    %c0_79 = arith.constant 0 : index
    %c512 = arith.constant 512 : index
    %112 = vector.load %arg9[%c0_79, %c512] : memref<16x1280xbf16, #tpu.memory_space<vmem>>, vector<16x512xbf16>
    %c0_80 = arith.constant 0 : index
    %c112_81 = arith.constant 112 : index
    %113 = vector.load %arg4[%c0_80, %c112_81] : memref<16x144xbf16, #tpu.memory_space<vmem>>, vector<16x16xbf16>
    %cst_82 = arith.constant dense<0.000000e+00> : vector<16x512xf32>
    %114 = tpu.matmul %113, %112, %cst_82 {dimension_numbers = #tpu.dot_dimension_numbers<[1], [0], [0], [1], [0, 0, 1, 1], [], []>} : vector<16x16xbf16>, vector<16x512xbf16>, vector<16x512xf32> -> vector<16x512xf32>
    %115 = arith.addf %111, %114 : vector<16x512xf32>
    %c0_83 = arith.constant 0 : index
    %c516 = arith.constant 516 : index
    %116 = vector.load %arg9[%c0_83, %c516] : memref<16x1280xbf16, #tpu.memory_space<vmem>>, vector<16x512xbf16>
    %c0_84 = arith.constant 0 : index
    %c128_85 = arith.constant 128 : index
    %117 = vector.load %arg4[%c0_84, %c128_85] : memref<16x144xbf16, #tpu.memory_space<vmem>>, vector<16x16xbf16>
    %cst_86 = arith.constant dense<0.000000e+00> : vector<16x512xf32>
    %118 = tpu.matmul %117, %116, %cst_86 {dimension_numbers = #tpu.dot_dimension_numbers<[1], [0], [0], [1], [0, 0, 1, 1], [], []>} : vector<16x16xbf16>, vector<16x512xbf16>, vector<16x512xf32> -> vector<16x512xf32>
    %119 = arith.addf %115, %118 : vector<16x512xf32>
    %cst_87 = arith.constant 0.000000e+00 : f32
    %120 = vector.broadcast %cst_87 : f32 to vector<16x512xf32>
    %121 = arith.maximumf %119, %120 : vector<16x512xf32>
    %cst_88 = arith.constant 0.000000e+00 : f32
    %122 = vector.shape_cast %24 : vector<1x512xi1> to vector<1x512xi1>
    %123 = vector.broadcast %122 : vector<1x512xi1> to vector<16x512xi1>
    %124 = vector.broadcast %cst_88 : f32 to vector<16x512xf32>
    %125 = arith.select %123, %121, %124 : vector<16x512xi1>, vector<16x512xf32>
    %126 = arith.truncf %125 : vector<16x512xf32> to vector<16x512xbf16>
    %c0_89 = arith.constant 0 : index
    %c384_90 = arith.constant 384 : index
    %127 = vector.load %arg9[%c0_89, %c384_90] : memref<16x1280xbf16, #tpu.memory_space<vmem>>, vector<16x512xbf16>
    tpu.vector_store %arg9[%c0_89, %c384_90], %126 {strides = array<i32>} : memref<16x1280xbf16, #tpu.memory_space<vmem>>, vector<16x512xbf16>,
    %c0_91 = arith.constant 0 : index
    %c0_92 = arith.constant 0 : index
    %128 = vector.load %arg7[%c0_91, %c0_92] : memref<16x1xf32, #tpu.memory_space<vmem>>, vector<16x1xf32>
    %129 = vector.shape_cast %128 : vector<16x1xf32> to vector<16x1xf32>
    %130 = vector.broadcast %129 : vector<16x1xf32> to vector<16x512xf32>
    %c0_93 = arith.constant 0 : index
    %c120 = arith.constant 120 : index
    %131 = vector.load %arg9[%c0_93, %c120] : memref<16x1280xbf16, #tpu.memory_space<vmem>>, vector<16x512xbf16>
    %c0_94 = arith.constant 0 : index
    %c0_95 = arith.constant 0 : index
    %132 = vector.load %arg6[%c0_94, %c0_95] : memref<16x144xbf16, #tpu.memory_space<vmem>>, vector<16x16xbf16>
    %cst_96 = arith.constant dense<0.000000e+00> : vector<16x512xf32>
    %133 = tpu.matmul %132, %131, %cst_96 {dimension_numbers = #tpu.dot_dimension_numbers<[1], [0], [0], [1], [0, 0, 1, 1], [], []>} : vector<16x16xbf16>, vector<16x512xbf16>, vector<16x512xf32> -> vector<16x512xf32>
    %134 = arith.addf %130, %133 : vector<16x512xf32>
    %c0_97 = arith.constant 0 : index
    %c128_98 = arith.constant 128 : index
    %135 = vector.load %arg9[%c0_97, %c128_98] : memref<16x1280xbf16, #tpu.memory_space<vmem>>, vector<16x512xbf16>
    %c0_99 = arith.constant 0 : index
    %c16_100 = arith.constant 16 : index
    %136 = vector.load %arg6[%c0_99, %c16_100] : memref<16x144xbf16, #tpu.memory_space<vmem>>, vector<16x16xbf16>
    %cst_101 = arith.constant dense<0.000000e+00> : vector<16x512xf32>
    %137 = tpu.matmul %136, %135, %cst_101 {dimension_numbers = #tpu.dot_dimension_numbers<[1], [0], [0], [1], [0, 0, 1, 1], [], []>} : vector<16x16xbf16>, vector<16x512xbf16>, vector<16x512xf32> -> vector<16x512xf32>
    %138 = arith.addf %134, %137 : vector<16x512xf32>
    %c0_102 = arith.constant 0 : index
    %c136 = arith.constant 136 : index
    %139 = vector.load %arg9[%c0_102, %c136] : memref<16x1280xbf16, #tpu.memory_space<vmem>>, vector<16x512xbf16>
    %c0_103 = arith.constant 0 : index
    %c32_104 = arith.constant 32 : index
    %140 = vector.load %arg6[%c0_103, %c32_104] : memref<16x144xbf16, #tpu.memory_space<vmem>>, vector<16x16xbf16>
    %cst_105 = arith.constant dense<0.000000e+00> : vector<16x512xf32>
    %141 = tpu.matmul %140, %139, %cst_105 {dimension_numbers = #tpu.dot_dimension_numbers<[1], [0], [0], [1], [0, 0, 1, 1], [], []>} : vector<16x16xbf16>, vector<16x512xbf16>, vector<16x512xf32> -> vector<16x512xf32>
    %142 = arith.addf %138, %141 : vector<16x512xf32>
    %c0_106 = arith.constant 0 : index
    %c376 = arith.constant 376 : index
    %143 = vector.load %arg9[%c0_106, %c376] : memref<16x1280xbf16, #tpu.memory_space<vmem>>, vector<16x512xbf16>
    %c0_107 = arith.constant 0 : index
    %c48_108 = arith.constant 48 : index
    %144 = vector.load %arg6[%c0_107, %c48_108] : memref<16x144xbf16, #tpu.memory_space<vmem>>, vector<16x16xbf16>
    %cst_109 = arith.constant dense<0.000000e+00> : vector<16x512xf32>
    %145 = tpu.matmul %144, %143, %cst_109 {dimension_numbers = #tpu.dot_dimension_numbers<[1], [0], [0], [1], [0, 0, 1, 1], [], []>} : vector<16x16xbf16>, vector<16x512xbf16>, vector<16x512xf32> -> vector<16x512xf32>
    %146 = arith.addf %142, %145 : vector<16x512xf32>
    %c0_110 = arith.constant 0 : index
    %c384_111 = arith.constant 384 : index
    %147 = vector.load %arg9[%c0_110, %c384_111] : memref<16x1280xbf16, #tpu.memory_space<vmem>>, vector<16x512xbf16>
    %c0_112 = arith.constant 0 : index
    %c64_113 = arith.constant 64 : index
    %148 = vector.load %arg6[%c0_112, %c64_113] : memref<16x144xbf16, #tpu.memory_space<vmem>>, vector<16x16xbf16>
    %cst_114 = arith.constant dense<0.000000e+00> : vector<16x512xf32>
    %149 = tpu.matmul %148, %147, %cst_114 {dimension_numbers = #tpu.dot_dimension_numbers<[1], [0], [0], [1], [0, 0, 1, 1], [], []>} : vector<16x16xbf16>, vector<16x512xbf16>, vector<16x512xf32> -> vector<16x512xf32>
    %150 = arith.addf %146, %149 : vector<16x512xf32>
    %c0_115 = arith.constant 0 : index
    %c392 = arith.constant 392 : index
    %151 = vector.load %arg9[%c0_115, %c392] : memref<16x1280xbf16, #tpu.memory_space<vmem>>, vector<16x512xbf16>
    %c0_116 = arith.constant 0 : index
    %c80_117 = arith.constant 80 : index
    %152 = vector.load %arg6[%c0_116, %c80_117] : memref<16x144xbf16, #tpu.memory_space<vmem>>, vector<16x16xbf16>
    %cst_118 = arith.constant dense<0.000000e+00> : vector<16x512xf32>
    %153 = tpu.matmul %152, %151, %cst_118 {dimension_numbers = #tpu.dot_dimension_numbers<[1], [0], [0], [1], [0, 0, 1, 1], [], []>} : vector<16x16xbf16>, vector<16x512xbf16>, vector<16x512xf32> -> vector<16x512xf32>
    %154 = arith.addf %150, %153 : vector<16x512xf32>
    %c0_119 = arith.constant 0 : index
    %c632 = arith.constant 632 : index
    %155 = vector.load %arg9[%c0_119, %c632] : memref<16x1280xbf16, #tpu.memory_space<vmem>>, vector<16x512xbf16>
    %c0_120 = arith.constant 0 : index
    %c96_121 = arith.constant 96 : index
    %156 = vector.load %arg6[%c0_120, %c96_121] : memref<16x144xbf16, #tpu.memory_space<vmem>>, vector<16x16xbf16>
    %cst_122 = arith.constant dense<0.000000e+00> : vector<16x512xf32>
    %157 = tpu.matmul %156, %155, %cst_122 {dimension_numbers = #tpu.dot_dimension_numbers<[1], [0], [0], [1], [0, 0, 1, 1], [], []>} : vector<16x16xbf16>, vector<16x512xbf16>, vector<16x512xf32> -> vector<16x512xf32>
    %158 = arith.addf %154, %157 : vector<16x512xf32>
    %c0_123 = arith.constant 0 : index
    %c640 = arith.constant 640 : index
    %159 = vector.load %arg9[%c0_123, %c640] : memref<16x1280xbf16, #tpu.memory_space<vmem>>, vector<16x512xbf16>
    %c0_124 = arith.constant 0 : index
    %c112_125 = arith.constant 112 : index
    %160 = vector.load %arg6[%c0_124, %c112_125] : memref<16x144xbf16, #tpu.memory_space<vmem>>, vector<16x16xbf16>
    %cst_126 = arith.constant dense<0.000000e+00> : vector<16x512xf32>
    %161 = tpu.matmul %160, %159, %cst_126 {dimension_numbers = #tpu.dot_dimension_numbers<[1], [0], [0], [1], [0, 0, 1, 1], [], []>} : vector<16x16xbf16>, vector<16x512xbf16>, vector<16x512xf32> -> vector<16x512xf32>
    %162 = arith.addf %158, %161 : vector<16x512xf32>
    %c0_127 = arith.constant 0 : index
    %c648 = arith.constant 648 : index
    %163 = vector.load %arg9[%c0_127, %c648] : memref<16x1280xbf16, #tpu.memory_space<vmem>>, vector<16x512xbf16>
    %c0_128 = arith.constant 0 : index
    %c128_129 = arith.constant 128 : index
    %164 = vector.load %arg6[%c0_128, %c128_129] : memref<16x144xbf16, #tpu.memory_space<vmem>>, vector<16x16xbf16>
    %cst_130 = arith.constant dense<0.000000e+00> : vector<16x512xf32>
    %165 = tpu.matmul %164, %163, %cst_130 {dimension_numbers = #tpu.dot_dimension_numbers<[1], [0], [0], [1], [0, 0, 1, 1], [], []>} : vector<16x16xbf16>, vector<16x512xbf16>, vector<16x512xf32> -> vector<16x512xf32>
    %166 = arith.addf %162, %165 : vector<16x512xf32>
    %c0_131 = arith.constant 0 : index
    %c0_132 = arith.constant 0 : index
    %c384_133 = arith.constant 384 : index
    %167 = vector.load %arg1[%c0_131, %c0_132, %c384_133] : memref<1x16x1280xbf16, #tpu.memory_space<vmem>>, vector<1x16x512xbf16>
    %168 = vector.shape_cast %167 : vector<1x16x512xbf16> to vector<16x512xbf16>
    %169 = arith.extf %168 : vector<16x512xbf16> to vector<16x512xf32>
    %cst_134 = arith.constant 0.000000e+00 : f32
    %170 = vector.broadcast %cst_134 : f32 to vector<16x512xf32>
    %171 = arith.maximumf %166, %170 : vector<16x512xf32>
    %172 = arith.addf %169, %171 : vector<16x512xf32>
    %c0_135 = arith.constant 0 : index
    %c0_136 = arith.constant 0 : index
    %c0_137 = arith.constant 0 : index
    %173 = vector.load %arg8[%c0_135, %c0_136, %c0_137] : memref<1x16x512xf32, #tpu.memory_space<vmem>>, vector<1x16x512xf32>
    %174 = vector.shape_cast %173 : vector<1x16x512xf32> to vector<16x512xf32>
    %175 = vector.shape_cast %172 : vector<16x512xf32> to vector<1x16x512xf32>
    tpu.vector_store %arg8[%c0_135, %c0_136, %c0_137], %175 {strides = array<i32>} : memref<1x16x512xf32, #tpu.memory_space<vmem>>, vector<1x16x512xf32>,
    return
  }
  func.func @transform_0(%arg0: i32) -> (i32, i32, i32) {
    %c0_i32 = arith.constant 0 : i32
    %c0_i32_0 = arith.constant 0 : i32
    %c0_i32_1 = arith.constant 0 : i32
    return %arg0, %c0_i32, %c0_i32_0 : i32, i32, i32
  }
  func.func @transform_1(%arg0: i32) -> (i32, i32) {
    %c0_i32 = arith.constant 0 : i32
    %c0_i32_0 = arith.constant 0 : i32
    %c0_i32_1 = arith.constant 0 : i32
    return %c0_i32, %c0_i32_0 : i32, i32
  }
  func.func @transform_2(%arg0: i32) -> (i32, i32) {
    %c0_i32 = arith.constant 0 : i32
    %c0_i32_0 = arith.constant 0 : i32
    %c0_i32_1 = arith.constant 0 : i32
    return %c0_i32, %c0_i32_0 : i32, i32
  }
  func.func @transform_3(%arg0: i32) -> (i32, i32) {
    %c0_i32 = arith.constant 0 : i32
    %c0_i32_0 = arith.constant 0 : i32
    %c0_i32_1 = arith.constant 0 : i32
    return %c0_i32, %c0_i32_0 : i32, i32
  }
  func.func @transform_4(%arg0: i32) -> (i32, i32) {
    %c0_i32 = arith.constant 0 : i32
    %c0_i32_0 = arith.constant 0 : i32
    %c0_i32_1 = arith.constant 0 : i32
    return %c0_i32, %c0_i32_0 : i32, i32
  }
  func.func @transform_5(%arg0: i32) -> (i32, i32) {
    %c0_i32 = arith.constant 0 : i32
    %c0_i32_0 = arith.constant 0 : i32
    %c0_i32_1 = arith.constant 0 : i32
    return %c0_i32, %c0_i32_0 : i32, i32
  }
  func.func @transform_6(%arg0: i32) -> (i32, i32) {
    %c0_i32 = arith.constant 0 : i32
    %c0_i32_0 = arith.constant 0 : i32
    %c0_i32_1 = arith.constant 0 : i32
    return %c0_i32, %c0_i32_0 : i32, i32
  }
  func.func @transform_7(%arg0: i32) -> (i32, i32, i32) {
    %c0_i32 = arith.constant 0 : i32
    %c0_i32_0 = arith.constant 0 : i32
    %c0_i32_1 = arith.constant 0 : i32
    return %arg0, %c0_i32, %c0_i32_0 : i32, i32, i32
  }
}

</mosaic_0001>

<bundles_post_ra>
// kernel: tpu_custom_call.1
= control target key start
LH: loop header
LB: loop body
LE: loop exit
PB: predicated region body
PF: predicated region fallthrough
CT: control target
= control target key end

     0   :  { %12 = vsyncpa [#allocation4], 0  ;;  %s5035_s0 = inlined_call_operand.hbm [shape: bf16[2,16,1280], index: 0, kind: input, shape index: {}]   ;;  %s5036_s1 = inlined_call_operand.vmem [shape: bf16[16,144], index: 1, kind: input, shape index: {}]   ;;  %s5037_s2 = inlined_call_operand.vmem [shape: f32[16,1], index: 2, kind: input, shape index: {}]   ;;  %s5038_s3 = inlined_call_operand.vmem [shape: bf16[16,144], index: 3, kind: input, shape index: {}]   ;;  %s5039_s4 = inlined_call_operand.vmem [shape: f32[16,1], index: 4, kind: input, shape index: {}]   ;;  %s5040_s5 = inlined_call_operand.vmem [shape: bf16[16,144], index: 5, kind: input, shape index: {}]   ;;  %s5041_s6 = inlined_call_operand.vmem [shape: f32[16,1], index: 6, kind: input, shape index: {}]   ;;  %s5042_s7 = inlined_call_operand.hbm [shape: f32[2,16,512], index: 7, kind: output, shape index: {}]  }
   0x1   :  { %14 = vsyncpa [#allocation4 + $0x1], 0 }
   0x2   :  { %15 = vsyncpa [#allocation5], 0 }
   0x3   :  { %17 = vsyncpa [#allocation5 + $0x1], 0  ;;  %s4163_s24 = smov 0   ;;  %s4165_s25 = smov 0  }
   0x4   :  { %s4167_s26 = smov 0   ;;  %s4169_s27 = smov 0  }
   0x5 LB: > { %5051 = sst [smem:[#allocation9_spill]] %s4098_s26  ;;  %s4184_s28 = sadd.s32 4294967295, %s4102_s27   ;;  %s4102_s27 = sphi %s4169_s27, %s5079_s27   ;;  %s4098_s26 = sphi %s4167_s26, %s5076_s26   ;;  %s4094_s25 = sphi %s4165_s25, %s5078_s25   ;;  %s4090_s24 = sphi %s4163_s24, %s5077_s24  }
   0x6   : > { %s3345_s29 = sadd.s32 4294967294, %s4102_s27   ;;  %s4188_s30 = sadd.s32 1, %s4102_s27  }
   0x7   : > { %s30_s8 = sadd.s32 1, %s4098_s26  ;;  %s27_s9 = ssub.s32 %s4102_s27, %s4188_s30 }
   0x8   : > { %p37_p0 = scmp.ne.s32.totalorder %s4098_s26, %s4094_s25  ;;  %p28_p1 = scmp.eq.s32.totalorder %s27_s9, 0 }
   0x9   : > { %p38_p2 = scmp.eq.s32.totalorder %s4102_s27, 0  ;;  %p43_p3 = scmp.ne.s32.totalorder %s4094_s25, %s4090_s24 }
   0xa   : > { %p44_p4 = scmp.eq.s32.totalorder %s4184_s28, 0  ;;  %p193_p7 = scmp.eq.s32.totalorder %s4184_s28, 1 }
   0xb   : > { %s4200_s10 = scalar_select %p28_p1, %s4098_s26, %s30_s8  }
   0xc   : > { %p39_p5 = por %p38_p2, %p37_p0  ;;  %p4202_p6 = por %p44_p4, %p43_p3 }
   0xd   : > { %5052 = sst [smem:[#allocation10_spill]] %s4200_s10  ;;  %p199_p8 = scmp.eq.s32.totalorder %s3345_s29, 1 }
   0xe   : > { %p3347_p9 = scmp.ge.s32.totalorder %s4102_s27, 2  ;;  %p3950_p10 = scmp.lt.s32.totalorder %s4102_s27, 2 }
   0xf   : > { %p4209_p11 = por %p193_p7, %p37_p0  ;;  %p4213_p12 = por %p199_p8, %p43_p3 }
  0x10   : > { %s237_s14 = sand.u32 1, %s4098_s26   ;;  %s3936_s15 = smul.u32 80, %s4102_s27 }
  0x11   : > { %s3935_s16 = smul.u32 80, %s237_s14  ;;  %p4222_p13 = pnand %p3950_p10, %p39_p5 }
  0x12   : > { %s246_s19 = scalar_lea.hbm %s5035_s0, %s3936_s15  ;;  %s238_s29 = scalar_lea.sflag [#allocation4], %s237_s14 }
  0x13   : > { %s247_s21 = sshll.u32 %s246_s19, 4  ;;  %s241_s22 = scalar_lea.vmem [#allocation3], %s3935_s16  ;;  %s248_s21 = int_to_ptr.hbm [resolvable:$true] %s247_s21 }
  0x14   : > { %s249_s23 = sshll.u32 %s241_s22, 4  ;;  %s4006_s8 = sshra.s32 %s248_s21, 4  ;;  %s250_s23 = int_to_ptr.vmem [resolvable:$true] %s249_s23  ;;  %s4007_s8 = int_to_ptr.hbm [resolvable:$true] %s4006_s8 }
  0x15   : > { %s4008_s9 = scalar_lea.hbm %s4007_s8, 80  ;;  %p4010_p1 = pneg %p4222_p13 }
  0x16   : > { %p4009_p0 = scmp.ne.s32.totalorder %s4007_s8, %s4008_s9  ;;  %s4013_s18 = scalar_lea.hbm %s5035_s0, 160 }
  0x17   : > { %p4014_p4 = scmp.lt.s32.totalorder %s4007_s8, %s5035_s0  ;;  %p4015_p5 = scmp.lt.s32.totalorder %s4013_s18, %s4008_s9 }
  0x18   : > { %p4011_p2 = pnand %p4010_p1, %p4009_p0 }
  0x19   : > { %p4016_p7 = por %p4015_p5, %p4014_p4 }
  0x1a   : > { %p4012_p3 = pneg %p4011_p2 }
  0x1c   : > { %p4017_p8 = pnand %p4016_p7, %p4012_p3 }
  0x1e   : > { %4020 = shalt.err (!%p4017_p8)
}
  0x1f   : > { %s4104_s14 = smov 640   ;;  %s4105_s16 = smov 40  }
  0x20   : > { %3945 = dma.hbm_to_vmem [thread:$0]  (!%p4222_p13), %s248_s21, 1280, %s250_s23, %s238_s29, %s4104_s14, %s4104_s14, %s4105_s16  }
  0x21   : > { %p3349_p10 = scmp.ge.s32.totalorder %s4102_s27, 1  ;;  %p257_p0 = scmp.lt.s32.totalorder %s4102_s27, 3 }
  0x23   : > { %p258_p1 = pnand %p3349_p10, %p257_p0 }
  0x25   : > { %261 = sbr.rel (%p258_p1) target bundleno = 1257 (0x4e9), region = 48 }
  0x2a   : > { %s4239_s19 = sand.u32 1, %s4094_s25  }
  0x2b   : > { %s3937_s26 = smul.u32 80, %s4239_s19  ;;  %s264_s10 = scalar_lea.sflag [#allocation4], %s4239_s19 }
  0x2d   : > { %s4243_s22 = scalar_lea.vmem [#allocation3], %s3937_s26 }
  0x2e   : > { %4081 = dma.done.wait (%p4202_p6), %s264_s10, 1280  }
  0x2f   : > { %4083 = vsyncadd (%p4202_p6), %s264_s10, 4294966016  ;;  %v3365_v0 = vld [vmem:[%s4243_s22 + $0x10] sm:$0xf]  ;;  %v3843_v1 = vld [vmem:[%s4243_s22 + $0x34] sm:$0xf0]  ;;  %s4106_s11 = smov 66  }
  0x30   : > { %v3357_v2 = vld [vmem:[%s4243_s22 + $0x8] sm:$0xf]  ;;  %v3366_v3 = vor.u32 %v3843_v1, %v3365_v0  ;;  %v3842_v4 = vld [vmem:[%s4243_s22 + $0x2c] sm:$0xf0]  ;;  %v3840_v5 = vld [vmem:[%s4243_s22 + $0xc] sm:$0xf] }
  0x31   : > { %v3359_v6 = vld [vmem:[%s4243_s22 + $0x30] sm:$0xf0]  ;;  %v3358_v7 = vor.u32 %v3842_v4, %v3357_v2  ;;  %s4107_s20 = smov 64   ;;  %v3373_v9 = vld [vmem:[%s4243_s22 + $0x18] sm:$0xf]  ;;  %s4108_s9 = smov 112  }
  0x32   : > { %v3362_v8 = vor.u32 %v3840_v5, %v3359_v6  ;;  %423 = vrot.lane.b32.xlu1 %v3366_v3, %s4106_s11  ;;  %v3844_v10 = vld [vmem:[%s4243_s22 + $0x3c] sm:$0xf0]  ;;  %v3841_v11 = vld [vmem:[%s4243_s22 + $0x14] sm:$0xf]  ;;  %v3367_v12 = vld [vmem:[%s4243_s22 + $0x38] sm:$0xf0] }
  0x33   : > { %419 = vrot.lane.b32.xlu0 %v3358_v7, %s4106_s11  ;;  %v3374_v13 = vor.u32 %v3844_v10, %v3373_v9  ;;  %v3370_v14 = vor.u32 %v3841_v11, %v3367_v12  ;;  %v3353_v15 = vld [vmem:[%s5036_s1] sm:$0xf]  ;;  %v3845_v16 = vld [vmem:[%s5036_s1 + $0x4] sm:$0xf0]  ;;  %s4109_s15 = smov 62   ;;  %s4110_s17 = smov 96  }
  0x34   : > { %510 = vrot.lane.b32.xlu2 %v3362_v8, %s4107_s20  ;;  %v4273_v17 = vor.u32 %v3845_v16, %v3353_v15  ;;  %s4111_s18 = smov 2   ;;  %s4112_s14 = smov 80   ;;  %v3850_v18 = vld [vmem:[%s4243_s22 + $0x10] sm:$0xf]  ;;  %v3415_v19 = vld [vmem:[%s4243_s22 + $0x34] sm:$0xf0] }
  0x35   : > { %v3418_v20 = vor.u32 %v3850_v18, %v3415_v19  ;;  %v3413_v21 = vld [vmem:[%s4243_s22 + $0xc] sm:$0xf]  ;;  %v3852_v22 = vld [vmem:[%s4243_s22 + $0x30] sm:$0xf0]  ;;  %v3853_v24 = vld [vmem:[%s4243_s22 + $0x38] sm:$0xf0] }
  0x36   : > { %v3421_v23 = vld [vmem:[%s4243_s22 + $0x14] sm:$0xf]  ;;  %v3414_v25 = vor.u32 %v3852_v22, %v3413_v21  ;;  %s4113_s16 = smov 126   ;;  %v3851_v27 = vld [vmem:[%s4243_s22 + $0x18] sm:$0xf]  ;;  %s4114_s26 = smov 48  }
  0x37   : > { %v3422_v26 = vor.u32 %v3853_v24, %v3421_v23  ;;  %v3423_v28 = vld [vmem:[%s4243_s22 + $0x3c] sm:$0xf0]  ;;  %v3429_v30 = vld [vmem:[%s4243_s22 + $0x1c] sm:$0xf]  ;;  %v3854_v31 = vld [vmem:[%s4243_s22 + $0x40] sm:$0xf0] }
  0x38   : > { %v3426_v29 = vor.u32 %v3851_v27, %v3423_v28  ;;  %v3430_v32 = vor.u32 %v3854_v31, %v3429_v30  ;;  %s4115_s10 = smov 32   ;;  %s4116_s21 = smov 16   ;;  %v4117_v36 = vmov 0   ;;  %vm518_vm0 = vcmask 523264   ;;  %v374_v46 = vld [vmem:[%s5037_s2 + $0x8] sm:$0xff]  ;;  %v373_v49 = vld [vmem:[%s5037_s2] sm:$0xff] }
  0x39   : > { %300 = vst [vmem:[#allocation2] sm:$0xff] %v4117_v36  ;;  %4003 = vset.pattern.permute.xlu2 %v4117_v36  ;;  %4004 = vset.pattern.permute.xlu0 %v4117_v36  ;;  %vm429_vm1 = vcmask 539648   ;;  %vm438_vm2 = vcmask 130048   ;;  %vm606_vm3 = vcmask 506880   ;;  %vm694_vm4 = vcmask 15360   ;;  %s4118_s23 = smov 4  }
  0x3a   : > { %508 = vrot.lane.b32.xlu1 %v3358_v7, %s4107_s20  ;;  %301 = vst [vmem:[#allocation2 + $0x8] sm:$0xf] %v4117_v36  ;;  %v3393_v63 = vld [vmem:[%s4243_s22 + $0xc] sm:$0xf]  ;;  %v3848_v2 = vld [vmem:[%s4243_s22 + $0x30] sm:$0xf0] }
  0x3b   : > { %421 = vrot.lane.b32.xlu0 %v3362_v8, %s4106_s11  ;;  %4005 = vset.pattern.permute.xlu1 %v4117_v36  ;;  %302 = vst [vmem:[#allocation2 + $0x28] sm:$0xff] %v4117_v36  ;;  %v3395_v4 = vld [vmem:[%s4243_s22 + $0x34] sm:$0xf0]  ;;  %v3401_v15 = vld [vmem:[%s4243_s22 + $0x14] sm:$0xf]  ;;  %vm902_vm5 = vcmask 1031168  }
  0x3c   : > { %512 = vrot.lane.b32.xlu2 %v3366_v3, %s4107_s20  ;;  %303 = vst [vmem:[#allocation2 + $0x30] sm:$0xf] %v4117_v36  ;;  %v3849_v16 = vld [vmem:[%s4243_s22 + $0x38] sm:$0xf0]  ;;  %v3403_v18 = vld [vmem:[%s4243_s22 + $0x3c] sm:$0xf0] }
  0x3d   : > { %304 = vst [vmem:[#allocation2 + $0x1c] sm:$0xff] %v4117_v36  ;;  %s4120_s29 = smov 8  }
  0x3e   : > { %305 = vst [vmem:[#allocation2 + $0x24] sm:$0xf] %v4117_v36 }
  0x3f   : > { %306 = vst [vmem:[#allocation2 + $0x44] sm:$0xff] %v4117_v36 }
  0x40   : > { %307 = vst [vmem:[#allocation2 + $0x4c] sm:$0xf] %v4117_v36 }
  0x42   : > { %427 = vrot.lane.b32.xlu1 %v3374_v13, %s4106_s11 }
  0x43   : > { %425 = vrot.lane.b32.xlu0 %v3370_v14, %s4106_s11 }
  0x44   : > { %506 = vrot.lane.b32.xlu2 %v4273_v17, %s4108_s9 }
  0x4a   : > { %598 = vrot.lane.b32.xlu1 %v3362_v8, %s4109_s15 }
  0x4b   : > { %596 = vrot.lane.b32.xlu0 %v3358_v7, %s4109_s15 }
  0x4c   : > { %600 = vrot.lane.b32.xlu2 %v3366_v3, %s4109_s15 }
  0x52   : > { %516 = vrot.lane.b32.xlu1 %v3374_v13, %s4107_s20 }
  0x53   : > { %514 = vrot.lane.b32.xlu0 %v3370_v14, %s4107_s20 }
  0x54   : > { %594 = vrot.lane.b32.xlu2 %v4273_v17, %s4110_s17 }
  0x5a   : > { %686 = vrot.lane.b32.xlu1 %v3362_v8, %s4111_s18  ;;  %v3394_v8 = vor.u32 %v3848_v2, %v3393_v63  ;;  %v3445_v63 = vld [vmem:[%s5036_s1 + $0x4] sm:$0xf] }
  0x5b   : > { %684 = vrot.lane.b32.xlu0 %v3358_v7, %s4111_s18 }
  0x5c   : > { %688 = vrot.lane.b32.xlu2 %v3366_v3, %s4111_s18  ;;  %v3846_v3 = vld [vmem:[%s4243_s22 + $0x10] sm:$0xf] }
  0x5d   : > { %v3398_v9 = vor.u32 %v3846_v3, %v3395_v4 }
  0x62   : > { %604 = vrot.lane.b32.xlu1 %v3374_v13, %s4109_s15 }
  0x63   : > { %602 = vrot.lane.b32.xlu0 %v3370_v14, %s4109_s15 }
  0x64   : > { %682 = vrot.lane.b32.xlu2 %v4273_v17, %s4112_s14 }
  0x6a   : > { %692 = vrot.lane.b32.xlu1 %v3374_v13, %s4111_s18 }
  0x6b   : > { %690 = vrot.lane.b32.xlu0 %v3370_v14, %s4111_s18 }
  0x6c   : > { %774 = vrot.lane.b32.xlu2 %v4273_v17, %s4107_s20 }
  0x72   : > { %894 = vrot.lane.b32.xlu1 %v3418_v20, %s4113_s16 }
  0x73   : > { %892 = vrot.lane.b32.xlu0 %v3414_v25, %s4113_s16 }
  0x74   : > { %896 = vrot.lane.b32.xlu2 %v3422_v26, %s4113_s16 }
  0x7a   : > { %980 = vrot.lane.b32.xlu1 %v3414_v25, %s4106_s11 }
  0x7b   : > { %869 = vrot.lane.b32.xlu0 %v4273_v17, %s4114_s26 }
  0x7c   : > { %982 = vrot.lane.b32.xlu2 %v3418_v20, %s4106_s11 }
  0x82   : > { %898 = vrot.lane.b32.xlu1 %v3426_v29, %s4113_s16 }
  0x83   : > { %984 = vrot.lane.b32.xlu0 %v3422_v26, %s4106_s11 }
  0x84   : > { %900 = vrot.lane.b32.xlu2 %v3430_v32, %s4113_s16  ;;  %s4119_s16 = smov 124  }
  0x8a   : > { %1067 = vrot.lane.b32.xlu1 %v3414_v25, %s4107_s20 }
  0x8b   : > { %978 = vrot.lane.b32.xlu0 %v4273_v17, %s4115_s10 }
  0x8c   : > { %1069 = vrot.lane.b32.xlu2 %v3418_v20, %s4107_s20 }
  0x8e   : > { %v511_v33 = vpop.permute.xlu2 %510 }
  0x92   : > { %986 = vrot.lane.b32.xlu1 %v3426_v29, %s4106_s11 }
  0x93   : > { %1071 = vrot.lane.b32.xlu0 %v3422_v26, %s4107_s20 }
  0x94   : > { %988 = vrot.lane.b32.xlu2 %v3430_v32, %s4106_s11  ;;  %s4056_s11 = scalar_lea.hbm %s5042_s7, 128 }
  0x96   : > { %v4311_v34 = vpop.permute.xlu2 %512 }
  0x97   : > { %v520_v43 = vsel %vm518_vm0, %v511_v33, %v4311_v34 }
  0x9a   : > { %1159 = vrot.lane.b32.xlu1 %v3414_v25, %s4109_s15 }
  0x9b   : > { %1065 = vrot.lane.b32.xlu0 %v4273_v17, %s4116_s21 }
  0x9c   : > { %1161 = vrot.lane.b32.xlu2 %v3418_v20, %s4109_s15  ;;  %v3402_v20 = vor.u32 %v3849_v16, %v3401_v15 }
  0x9e   : > { %v4317_v35 = vpop.permute.xlu2 %506 }
  0xa2   : > { %1073 = vrot.lane.b32.xlu1 %v3426_v29, %s4107_s20 }
  0xa3   : > { %1163 = vrot.lane.b32.xlu0 %v3422_v26, %s4109_s15 }
  0xa4   : > { %v424_v37 = vpop.permute.xlu1 %423  ;;  %1075 = vrot.lane.b32.xlu2 %v3430_v32, %s4107_s20 }
  0xa5   : > { %v420_v38 = vpop.permute.xlu0 %419 }
  0xa6   : > { %v4322_v39 = vpop.permute.xlu2 %600 }
  0xaa   : > { %1167 = vrot.lane.b32.xlu1 %v3430_v32, %s4109_s15 }
  0xab   : > { %1165 = vrot.lane.b32.xlu0 %v3426_v29, %s4109_s15  ;;  %s3934_s15 = sshll.u32 %s4184_s28, 6 }
  0xac   : > { %v509_v40 = vpop.permute.xlu1 %508  ;;  %377 = vperm.xlu2 %4003, %v373_v49   ;;  %s3268_s18 = scalar_lea.hbm %s5042_s7, %s3934_s15 }
  0xad   : > { %v422_v41 = vpop.permute.xlu0 %421  ;;  %v519_v42 = vsel %vm518_vm0, %v509_v40, %v511_v33 }
  0xae   : > { %v430_v44 = vsel %vm429_vm1, %v420_v38, %v422_v41  ;;  %v431_v45 = vsel %vm429_vm1, %v422_v41, %v424_v37  ;;  %v595_v47 = vpop.permute.xlu2 %594 }
  0xaf   : > { %449 = vmatpush.bf16.msra.mxu0 %v430_v44  ;;  %463 = vmatpush.bf16.msra.mxu1 %v431_v45 }
  0xb2   : > { %3375 = vmatmul.msk.bf16.vlgmr.msra.gmra.mxu0 %vm438_vm2, %v4273_v17  ;;  %3376 = vmatmul.msk.bf16.vlgmr.msra.gmra.mxu1 %vm438_vm2, %v4273_v17 }
  0xb3   : > { %537 = vmatpush.bf16.msrb.mxu0 %v519_v42  ;;  %551 = vmatpush.bf16.msrb.mxu1 %v520_v43 }
  0xb4   : > { %382 = vperm.xlu0 %4004, %v374_v46   ;;  %v428_v48 = vpop.permute.xlu1 %427 }
  0xb5   : > { %v426_v50 = vpop.permute.xlu0 %425 }
  0xb6   : > { %v432_v51 = vsel %vm429_vm1, %v424_v37, %v426_v50  ;;  %v433_v52 = vsel %vm429_vm1, %v426_v50, %v428_v48  ;;  %v689_v54 = vpop.permute.xlu2 %688 }
  0xb7   : > { %477 = vmatpush.bf16.msra.mxu2 %v432_v51  ;;  %491 = vmatpush.bf16.msra.mxu3 %v433_v52 }
  0xba   : > { %3377 = vmatmul.msk.bf16.vlgmr.msra.gmra.mxu2 %vm438_vm2, %v4273_v17  ;;  %3378 = vmatmul.msk.bf16.vlgmr.msra.gmra.mxu3 %vm438_vm2, %v4273_v17  ;;  %v3847_v17 = vld [vmem:[%s4243_s22 + $0x18] sm:$0xf] }
  0xbb   : > { %v3406_v21 = vor.u32 %v3847_v17, %v3403_v18 }
  0xbc   : > { %v599_v53 = vpop.permute.xlu1 %598 }
  0xbd   : > { %v597_v55 = vpop.permute.xlu0 %596  ;;  %v608_v56 = vsel %vm606_vm3, %v599_v53, %v4322_v39 }
  0xbe   : > { %v607_v57 = vsel %vm606_vm3, %v597_v55, %v599_v53  ;;  %639 = vmatpush.bf16.msra.mxu1 %v608_v56  ;;  %v683_v59 = vpop.permute.xlu2 %682 }
  0xbf   : > { %625 = vmatpush.bf16.msra.mxu0 %v607_v57 }
  0xc2   : > { %3379 = vmatmul.msk.bf16.vlgmr.msrb.gmra.mxu0 %vm438_vm2, %v4317_v35  ;;  %3380 = vmatmul.msk.bf16.vlgmr.msrb.gmra.mxu1 %vm438_vm2, %v4317_v35 }
  0xc4   : > { %v517_v58 = vpop.permute.xlu1 %516 }
  0xc5   : > { %v515_v60 = vpop.permute.xlu0 %514 }
  0xc6   : > { %v521_v61 = vsel %vm518_vm0, %v4311_v34, %v515_v60  ;;  %v522_v62 = vsel %vm518_vm0, %v515_v60, %v517_v58  ;;  %v4363_v1 = vpop.permute.xlu2 %774 }
  0xc7   : > { %565 = vmatpush.bf16.msrb.mxu2 %v521_v61  ;;  %579 = vmatpush.bf16.msrb.mxu3 %v522_v62 }
  0xca   : > { %3381 = vmatmul.msk.bf16.vlgmr.msrb.gmra.mxu2 %vm438_vm2, %v4317_v35  ;;  %3382 = vmatmul.msk.bf16.vlgmr.msrb.gmra.mxu3 %vm438_vm2, %v4317_v35 }
  0xcc   : > { %v687_v0 = vpop.permute.xlu1 %686 }
  0xcd   : > { %v685_v5 = vpop.permute.xlu0 %684  ;;  %v696_v6 = vsel %vm694_vm4, %v687_v0, %v689_v54 }
  0xce   : > { %v695_v7 = vsel %vm694_vm4, %v685_v5, %v687_v0  ;;  %727 = vmatpush.bf16.msrb.mxu1 %v696_v6  ;;  %v897_v14 = vpop.permute.xlu2 %896  ;;  %v3855_v0 = vld [vmem:[%s5036_s1 + $0x8] sm:$0xf0] }
  0xcf   : > { %713 = vmatpush.bf16.msrb.mxu0 %v695_v7 }
  0xd2   : > { %3383 = vmatmul.msk.bf16.vlgmr.msra.gmra.mxu0 %vm438_vm2, %v595_v47  ;;  %3384 = vmatmul.msk.bf16.vlgmr.msra.gmra.mxu1 %vm438_vm2, %v595_v47 }
  0xd3   : > { %806 = vmatpush.bf16.msra.mxu0 %v3394_v8  ;;  %820 = vmatpush.bf16.msra.mxu1 %v3398_v9 }
  0xd4   : > { %v605_v10 = vpop.permute.xlu1 %604 }
  0xd5   : > { %v603_v11 = vpop.permute.xlu0 %602 }
  0xd6   : > { %v609_v12 = vsel %vm606_vm3, %v4322_v39, %v603_v11  ;;  %v610_v13 = vsel %vm606_vm3, %v603_v11, %v605_v10  ;;  %v983_v25 = vpop.permute.xlu2 %982 }
  0xd7   : > { %653 = vmatpush.bf16.msra.mxu2 %v609_v12  ;;  %667 = vmatpush.bf16.msra.mxu3 %v610_v13 }
  0xda   : > { %3385 = vmatmul.msk.bf16.vlgmr.msra.gmra.mxu2 %vm438_vm2, %v595_v47  ;;  %3386 = vmatmul.msk.bf16.vlgmr.msra.gmra.mxu3 %vm438_vm2, %v595_v47 }
  0xdc   : > { %v693_v19 = vpop.permute.xlu1 %692 }
  0xdd   : > { %v691_v22 = vpop.permute.xlu0 %690 }
  0xde   : > { %v697_v23 = vsel %vm694_vm4, %v689_v54, %v691_v22  ;;  %v698_v24 = vsel %vm694_vm4, %v691_v22, %v693_v19  ;;  %v901_v30 = vpop.permute.xlu2 %900  ;;  %vm1540_vm4 = vcmask 1014784  }
  0xdf   : > { %741 = vmatpush.bf16.msrb.mxu2 %v697_v23  ;;  %755 = vmatpush.bf16.msrb.mxu3 %v698_v24 }
  0xe2   : > { %3387 = vmatmul.msk.bf16.vlgmr.msrb.gmra.mxu0 %vm438_vm2, %v683_v59  ;;  %3388 = vmatmul.msk.bf16.vlgmr.msrb.gmra.mxu1 %vm438_vm2, %v683_v59 }
  0xe3   : > { %834 = vmatpush.bf16.msra.mxu2 %v3402_v20  ;;  %848 = vmatpush.bf16.msra.mxu3 %v3406_v21 }
  0xe4   : > { %v895_v26 = vpop.permute.xlu1 %894 }
  0xe5   : > { %v904_v27 = vsel %vm902_vm5, %v895_v26, %v897_v14  ;;  %v893_v28 = vpop.permute.xlu0 %892 }
  0xe6   : > { %v903_v29 = vsel %vm902_vm5, %v893_v28, %v895_v26  ;;  %935 = vmatpush.bf16.msrb.mxu1 %v904_v27  ;;  %v1070_v35 = vpop.permute.xlu2 %1069 }
  0xe7   : > { %921 = vmatpush.bf16.msrb.mxu0 %v903_v29 }
  0xea   : > { %3389 = vmatmul.msk.bf16.vlgmr.msrb.gmra.mxu2 %vm438_vm2, %v683_v59  ;;  %3390 = vmatmul.msk.bf16.vlgmr.msrb.gmra.mxu3 %vm438_vm2, %v683_v59 }
  0xec   : > { %v981_v31 = vpop.permute.xlu1 %980 }
  0xed   : > { %v870_v32 = vpop.permute.xlu0 %869  ;;  %v990_v33 = vsel %vm429_vm1, %v981_v31, %v983_v25 }
  0xee   : > { %v989_v42 = vpop.permute.xlu2 %988 }
  0xf2   : > { %3407 = vmatmul.msk.bf16.vlgmr.msra.gmra.mxu0 %vm438_vm2, %v4363_v1  ;;  %3408 = vmatmul.msk.bf16.vlgmr.msra.gmra.mxu1 %vm438_vm2, %v4363_v1 }
  0xf3   : > { %1008 = vmatpush.bf16.msra.mxu0 %v990_v33 }
  0xf4   : > { %v899_v34 = vpop.permute.xlu1 %898 }
  0xf5   : > { %v905_v36 = vsel %vm902_vm5, %v897_v14, %v899_v34  ;;  %v906_v37 = vsel %vm902_vm5, %v899_v34, %v901_v30  ;;  %v985_v38 = vpop.permute.xlu0 %984  ;;  %vm2289_vm5 = vcmask 64512  }
  0xf6   : > { %949 = vmatpush.bf16.msrb.mxu2 %v905_v36  ;;  %v991_v39 = vsel %vm429_vm1, %v983_v25, %v985_v38  ;;  %963 = vmatpush.bf16.msrb.mxu3 %v906_v37  ;;  %v1162_v49 = vpop.permute.xlu2 %1161 }
  0xf7   : > { %1022 = vmatpush.bf16.msra.mxu1 %v991_v39 }
  0xfa   : > { %3409 = vmatmul.msk.bf16.vlgmr.msra.gmra.mxu2 %vm438_vm2, %v4363_v1  ;;  %3410 = vmatmul.msk.bf16.vlgmr.msra.gmra.mxu3 %vm438_vm2, %v4363_v1  ;;  %v3446_v1 = vor.u32 %v3855_v0, %v3445_v63  ;;  %v3856_v0 = vld [vmem:[#allocation2 + $0x8] sm:$0xf] }
  0xfc   : > { %v1068_v40 = vpop.permute.xlu1 %1067 }
  0xfd   : > { %v979_v41 = vpop.permute.xlu0 %978  ;;  %v1077_v43 = vsel %vm518_vm0, %v1068_v40, %v1070_v35 }
  0xfe   : > { %v1076_v53 = vpop.permute.xlu2 %1075 }
 0x102   : > { %3431 = vmatmul.msk.bf16.vlgmr.msrb.gmra.mxu0 %vm438_vm2, %v870_v32  ;;  %3432 = vmatmul.msk.bf16.vlgmr.msrb.gmra.mxu1 %vm438_vm2, %v870_v32 }
 0x103   : > { %1095 = vmatpush.bf16.msrb.mxu0 %v1077_v43 }
 0x104   : > { %v987_v44 = vpop.permute.xlu1 %986 }
 0x105   : > { %v992_v45 = vsel %vm429_vm1, %v985_v38, %v987_v44  ;;  %v993_v46 = vsel %vm429_vm1, %v987_v44, %v989_v42  ;;  %v1072_v47 = vpop.permute.xlu0 %1071 }
 0x106   : > { %1036 = vmatpush.bf16.msra.mxu2 %v992_v45  ;;  %v1078_v48 = vsel %vm518_vm0, %v1070_v35, %v1072_v47  ;;  %1050 = vmatpush.bf16.msra.mxu3 %v993_v46  ;;  %v378_v6 = vpop.permute.xlu2 %377 }
 0x107   : > { %1109 = vmatpush.bf16.msrb.mxu1 %v1078_v48 }
 0x10a   : > { %3433 = vmatmul.msk.bf16.vlgmr.msrb.gmra.mxu2 %vm438_vm2, %v870_v32  ;;  %3434 = vmatmul.msk.bf16.vlgmr.msrb.gmra.mxu3 %vm438_vm2, %v870_v32 }
 0x10c   : > { %v1160_v50 = vpop.permute.xlu1 %1159 }
 0x10d   : > { %v1066_v51 = vpop.permute.xlu0 %1065  ;;  %v1169_v52 = vsel %vm606_vm3, %v1160_v50, %v1162_v49  ;;  %v3858_v50 = vld [vmem:[#allocation2 + $0x28] sm:$0xf0] }
 0x112   : > { %3435 = vmatmul.msk.bf16.vlgmr.msra.gmra.mxu0 %vm438_vm2, %v979_v41  ;;  %3436 = vmatmul.msk.bf16.vlgmr.msra.gmra.mxu1 %vm438_vm2, %v979_v41 }
 0x113   : > { %1187 = vmatpush.bf16.msra.mxu0 %v1169_v52 }
 0x114   : > { %v1074_v54 = vpop.permute.xlu1 %1073 }
 0x115   : > { %v1079_v55 = vsel %vm518_vm0, %v1072_v47, %v1074_v54  ;;  %v1080_v56 = vsel %vm518_vm0, %v1074_v54, %v1076_v53  ;;  %v1164_v57 = vpop.permute.xlu0 %1163 }
 0x116   : > { %1123 = vmatpush.bf16.msrb.mxu2 %v1079_v55  ;;  %v1170_v58 = vsel %vm606_vm3, %v1162_v49, %v1164_v57  ;;  %1137 = vmatpush.bf16.msrb.mxu3 %v1080_v56  ;;  %v3457_v49 = vld [vmem:[#allocation2 + $0x4] sm:$0xf] }
 0x117   : > { %1201 = vmatpush.bf16.msra.mxu1 %v1170_v58  ;;  %v3458_v53 = vor.u32 %v3858_v50, %v3457_v49 }
 0x119   : > { %1322 = vrot.lane.b32.xlu1 %v3458_v53, %s4118_s23 }
 0x11a   : > { %3437 = vmatmul.msk.bf16.vlgmr.msra.gmra.mxu2 %vm438_vm2, %v979_v41  ;;  %3438 = vmatmul.msk.bf16.vlgmr.msra.gmra.mxu3 %vm438_vm2, %v979_v41 }
 0x11c   : > { %v1168_v59 = vpop.permute.xlu1 %1167 }
 0x11d   : > { %v1166_v60 = vpop.permute.xlu0 %1165 }
 0x11e   : > { %v1171_v61 = vsel %vm606_vm3, %v1164_v57, %v1166_v60  ;;  %v1172_v62 = vsel %vm606_vm3, %v1166_v60, %v1168_v59  ;;  %vm1332_vm3 = vcmask 31744  }
 0x11f   : > { %1215 = vmatpush.bf16.msra.mxu2 %v1171_v61  ;;  %1229 = vmatpush.bf16.msra.mxu3 %v1172_v62 }
 0x122   : > { %3439 = vmatmul.msk.bf16.vlgmr.msrb.gmra.mxu0 %vm438_vm2, %v1066_v51  ;;  %3440 = vmatmul.msk.bf16.vlgmr.msrb.gmra.mxu1 %vm438_vm2, %v1066_v51 }
 0x12a   : > { %3441 = vmatmul.msk.bf16.vlgmr.msrb.gmra.mxu2 %vm438_vm2, %v1066_v51  ;;  %3442 = vmatmul.msk.bf16.vlgmr.msrb.gmra.mxu3 %vm438_vm2, %v1066_v51 }
 0x12f   : > { %v451_v2 = vpop.f32.mrf.mxu0  ;;  %v465_v3 = vpop.f32.mrf.mxu1 }
 0x130   : > { %v498_v9 = vadd.f32 %v451_v2, %v378_v6  ;;  %v499_v10 = vadd.f32 %v465_v3, %v378_v6 }
 0x132   : > { %3447 = vmatmul.msk.bf16.vlgmr.msra.gmra.mxu0 %vm438_vm2, %v3446_v1  ;;  %3448 = vmatmul.msk.bf16.vlgmr.msra.gmra.mxu1 %vm438_vm2, %v3446_v1 }
 0x137   : > { %v4431_v4 = vpop.f32.mrf.mxu0  ;;  %v4433_v5 = vpop.f32.mrf.mxu1 }
 0x13a   : > { %3449 = vmatmul.msk.bf16.vlgmr.msra.gmra.mxu2 %vm438_vm2, %v3446_v1  ;;  %3450 = vmatmul.msk.bf16.vlgmr.msra.gmra.mxu3 %vm438_vm2, %v3446_v1  ;;  %v3459_v1 = vld [vmem:[#allocation2 + $0x2c] sm:$0xf0] }
 0x13d   : > { %v479_v7 = vpop.f32.mrf.mxu2  ;;  %v493_v8 = vpop.f32.mrf.mxu3 }
 0x13e   : > { %v500_v19 = vadd.f32 %v479_v7, %v378_v6  ;;  %v501_v20 = vadd.f32 %v493_v8, %v378_v6  ;;  %v3462_v6 = vor.u32 %v3856_v0, %v3459_v1 }
 0x13f   : > { %v539_v11 = vpop.f32.mrf.mxu0  ;;  %v553_v12 = vpop.f32.mrf.mxu1 }
 0x140   : > { %v586_v13 = vadd.f32 %v539_v11, %v498_v9  ;;  %v587_v14 = vadd.f32 %v553_v12, %v499_v10  ;;  %1324 = vrot.lane.b32.xlu2 %v3462_v6, %s4118_s23  ;;  %v3453_v9 = vld [vmem:[%s5038_s3] sm:$0xf]  ;;  %v3861_v10 = vld [vmem:[%s5038_s3 + $0x4] sm:$0xf0] }
 0x145   : > { %v4437_v15 = vpop.f32.mrf.mxu2  ;;  %v4439_v16 = vpop.f32.mrf.mxu3 }
 0x147   : > { %v4441_v17 = vpop.f32.mrf.mxu0  ;;  %v4443_v18 = vpop.f32.mrf.mxu1 }
 0x14d   : > { %v567_v21 = vpop.f32.mrf.mxu2  ;;  %v581_v22 = vpop.f32.mrf.mxu3 }
 0x14e   : > { %v588_v23 = vadd.f32 %v567_v21, %v500_v19  ;;  %v589_v24 = vadd.f32 %v581_v22, %v501_v20  ;;  %v3501_v20 = vld [vmem:[#allocation2 + $0x8] sm:$0xf]  ;;  %v3868_v21 = vld [vmem:[#allocation2 + $0x2c] sm:$0xf0] }
 0x14f   : > { %v627_v25 = vpop.f32.mrf.mxu0  ;;  %v641_v26 = vpop.f32.mrf.mxu1 }
 0x150   : > { %v674_v27 = vadd.f32 %v627_v25, %v586_v13  ;;  %v675_v28 = vadd.f32 %v641_v26, %v587_v14  ;;  %v4501_v13 = vor.u32 %v3861_v10, %v3453_v9 }
 0x152   : > { %5057 = vst [vmem:[#allocation11_spill] sm:$0xff] %v4501_v13  ;;  %1412 = vrot.lane.b32.xlu2 %v4501_v13, %s4108_s9 }
 0x155   : > { %v4445_v29 = vpop.f32.mrf.mxu2  ;;  %v4447_v30 = vpop.f32.mrf.mxu3 }
 0x157   : > { %v4449_v31 = vpop.f32.mrf.mxu0  ;;  %v4451_v32 = vpop.f32.mrf.mxu1 }
 0x15d   : > { %v655_v33 = vpop.f32.mrf.mxu2  ;;  %v669_v34 = vpop.f32.mrf.mxu3 }
 0x15e   : > { %v676_v35 = vadd.f32 %v655_v33, %v588_v23  ;;  %v677_v36 = vadd.f32 %v669_v34, %v589_v24  ;;  %v4509_v24 = vor.u32 %v3868_v21, %v3501_v20 }
 0x15f   : > { %v715_v37 = vpop.f32.mrf.mxu0  ;;  %v729_v38 = vpop.f32.mrf.mxu1 }
 0x160   : > { %v4453_v39 = vadd.f32 %v715_v37, %v674_v27  ;;  %v4455_v40 = vadd.f32 %v729_v38, %v675_v28  ;;  %5058 = vst [vmem:[#allocation12_spill] sm:$0xff] %v4509_v24  ;;  %1530 = vrot.lane.b32.xlu2 %v4509_v24, %s4119_s16  ;;  %v308_v27 = vlaneseq }
 0x162   : > { %v309_v34 = vand.u32 127, %v308_v27 }
 0x164   : > { %v310_v38 = vadd.s32 128, %v309_v34  ;;  %v317_v9 = vand.u32 31, %v309_v34 }
 0x165   : > { %v4457_v41 = vpop.f32.mrf.mxu2  ;;  %v4459_v42 = vpop.f32.mrf.mxu3 }
 0x166   : > { %v324_v21 = vand.u32 31, %v310_v38  ;;  %vm361_vm6 = vcmp.ge.s32.totalorder %v317_v9, 8  ;;  %vm365_vm7 = vcmp.lt.s32.totalorder %v317_v9, 24  ;;  %v312_v38 = vadd.s32 384, %v309_v34 }
 0x167   : > { %v4461_v43 = vpop.f32.mrf.mxu0  ;;  %v4463_v44 = vpop.f32.mrf.mxu1  ;;  %vm4535_vm10 = vmand %vm361_vm6, %vm365_vm7  ;;  %vm2497_vm6 = vcmask 982016  }
 0x168   : > { %1507 = vrot.lane.b32.xlu2 %v4501_v13, %s4110_s17  ;;  %vm362_vm8 = vcmp.ge.s32.totalorder %v324_v21, 8  ;;  %vm366_vm9 = vcmp.lt.s32.totalorder %v324_v21, 24 }
 0x169   : > { %vm4539_vm11 = vmand %vm362_vm8, %vm366_vm9 }
 0x16d   : > { %v743_v45 = vpop.f32.mrf.mxu2  ;;  %v757_v46 = vpop.f32.mrf.mxu3 }
 0x16e   : > { %v4465_v47 = vadd.f32 %v743_v45, %v676_v35  ;;  %v4467_v48 = vadd.f32 %v757_v46, %v677_v36  ;;  %v383_v35 = vpop.permute.xlu0 %382 }
 0x16f   : > { %v808_v51 = vpop.f32.mrf.mxu0  ;;  %v822_v52 = vpop.f32.mrf.mxu1  ;;  %v502_v45 = vadd.f32 %v4431_v4, %v383_v35  ;;  %v503_v46 = vadd.f32 %v4433_v5, %v383_v35 }
 0x170   : > { %v855_v53 = vadd.f32 %v808_v51, %v4453_v39  ;;  %v856_v0 = vadd.f32 %v822_v52, %v4455_v40 }
 0x171   : > { %v590_v1 = vadd.f32 %v4441_v17, %v502_v45  ;;  %v591_v6 = vadd.f32 %v4443_v18, %v503_v46 }
 0x173   : > { %v678_v27 = vadd.f32 %v4449_v31, %v590_v1  ;;  %v679_v4 = vadd.f32 %v4451_v32, %v591_v6 }
 0x175   : > { %v4470_v54 = vpop.f32.mrf.mxu2  ;;  %v4472_v55 = vpop.f32.mrf.mxu3  ;;  %v766_v24 = vadd.f32 %v4461_v43, %v678_v27  ;;  %v767_v39 = vadd.f32 %v4463_v44, %v679_v4 }
 0x177   : > { %v4474_v56 = vpop.f32.mrf.mxu0  ;;  %v4476_v57 = vpop.f32.mrf.mxu1 }
 0x178   : > { %v859_v31 = vadd.f32 %v4474_v56, %v766_v24  ;;  %v860_v32 = vadd.f32 %v4476_v57, %v767_v39  ;;  %v504_v56 = vadd.f32 %v4437_v15, %v383_v35  ;;  %v505_v57 = vadd.f32 %v4439_v16, %v383_v35 }
 0x179   : > { %v311_v24 = vadd.s32 256, %v309_v34 }
 0x17d   : > { %v4478_v58 = vpop.f32.mrf.mxu2  ;;  %v4480_v59 = vpop.f32.mrf.mxu3 }
 0x17e   : > { %v857_v15 = vadd.f32 %v4478_v58, %v4465_v47  ;;  %v858_v16 = vadd.f32 %v4480_v59, %v4467_v48 }
 0x17f   : > { %v923_v60 = vpop.f32.mrf.mxu0  ;;  %v937_v61 = vpop.f32.mrf.mxu1 }
 0x180   : > { %v970_v10 = vadd.f32 %v923_v60, %v855_v53  ;;  %v971_v20 = vadd.f32 %v937_v61, %v856_v0 }
 0x185   : > { %v4482_v62 = vpop.f32.mrf.mxu2  ;;  %v4484_v63 = vpop.f32.mrf.mxu3 }
 0x187   : > { %v4486_v2 = vpop.f32.mrf.mxu0  ;;  %v4488_v3 = vpop.f32.mrf.mxu1 }
 0x18d   : > { %v4491_v7 = vpop.f32.mrf.mxu2  ;;  %v4493_v8 = vpop.f32.mrf.mxu3 }
 0x18e   : > { %v972_v21 = vadd.f32 %v4491_v7, %v857_v15  ;;  %v973_v27 = vadd.f32 %v4493_v8, %v858_v16 }
 0x18f   : > { %v1010_v11 = vpop.f32.mrf.mxu0  ;;  %v1024_v12 = vpop.f32.mrf.mxu1 }
 0x190   : > { %v1057_v13 = vadd.f32 %v1010_v11, %v970_v10  ;;  %v1058_v5 = vadd.f32 %v1024_v12, %v971_v20  ;;  %v974_v12 = vadd.f32 %v4486_v2, %v859_v31  ;;  %v592_v2 = vadd.f32 %v4445_v29, %v504_v56 }
 0x191   : > { %v331_v20 = vand.u32 31, %v311_v24 }
 0x192   : > { %v680_v34 = vadd.f32 %v4457_v41, %v592_v2 }
 0x193   : > { %vm363_vm12 = vcmp.ge.s32.totalorder %v331_v20, 8  ;;  %vm367_vm13 = vcmp.lt.s32.totalorder %v331_v20, 24 }
 0x194   : > { %v768_v58 = vadd.f32 %v4470_v54, %v680_v34  ;;  %vm4575_vm0 = vmand %vm363_vm12, %vm367_vm13 }
 0x195   : > { %v4505_v14 = vpop.f32.mrf.mxu2  ;;  %v4507_v19 = vpop.f32.mrf.mxu3 }
 0x196   : > { %v861_v39 = vadd.f32 %v4482_v62, %v768_v58  ;;  %v1323_v58 = vpop.permute.xlu1 %1322 }
 0x197   : > { %v1012_v22 = vpop.f32.mrf.mxu0  ;;  %v1026_v23 = vpop.f32.mrf.mxu1 }
 0x198   : > { %v1061_v45 = vadd.f32 %v1012_v22, %v974_v12 }
 0x19d   : > { %v4513_v25 = vpop.f32.mrf.mxu2  ;;  %v4515_v26 = vpop.f32.mrf.mxu3 }
 0x19e   : > { %v1059_v59 = vadd.f32 %v4513_v25, %v972_v21  ;;  %v1060_v41 = vadd.f32 %v4515_v26, %v973_v27  ;;  %v5071_v21 = vld [vmem:[#allocation12_spill] sm:$0xff]  ;;  %v5072_v27 = vld [vmem:[#allocation11_spill] sm:$0xff] }
 0x19f   : > { %v1097_v28 = vpop.f32.mrf.mxu0  ;;  %v1111_v33 = vpop.f32.mrf.mxu1 }
 0x1a0   : > { %v1144_v17 = vadd.f32 %v1097_v28, %v1057_v13  ;;  %v1145_v18 = vadd.f32 %v1111_v33, %v1058_v5  ;;  %v975_v13 = vadd.f32 %v4488_v3, %v860_v32  ;;  %v593_v3 = vadd.f32 %v4447_v30, %v505_v57 }
 0x1a1   : > { %v338_v30 = vand.u32 31, %v312_v38 }
 0x1a2   : > { %v1062_v46 = vadd.f32 %v1026_v23, %v975_v13  ;;  %v681_v35 = vadd.f32 %v4459_v42, %v593_v3 }
 0x1a3   : > { %vm4565_vm14 = vcmp.ge.s32.totalorder %v338_v30, 8  ;;  %vm368_vm15 = vcmp.lt.s32.totalorder %v338_v30, 24 }
 0x1a4   : > { %v769_v48 = vadd.f32 %v4472_v55, %v681_v35  ;;  %vm4581_vm1 = vmand %vm4565_vm14, %vm368_vm15 }
 0x1a5   : > { %v4519_v36 = vpop.f32.mrf.mxu2  ;;  %v4521_v37 = vpop.f32.mrf.mxu3 }
 0x1a7   : > { %v1099_v49 = vpop.f32.mrf.mxu0  ;;  %v1113_v50 = vpop.f32.mrf.mxu1 }
 0x1a8   : > { %v1148_v22 = vadd.f32 %v1099_v49, %v1061_v45  ;;  %v1149_v23 = vadd.f32 %v1113_v50, %v1062_v46 }
 0x1ad   : > { %v1125_v51 = vpop.f32.mrf.mxu2  ;;  %v1139_v40 = vpop.f32.mrf.mxu3 }
 0x1ae   : > { %v1146_v7 = vadd.f32 %v1125_v51, %v1059_v59  ;;  %v1147_v8 = vadd.f32 %v1139_v40, %v1060_v41  ;;  %v5068_v40 = vmov 0 }
 0x1af   : > { %v1189_v52 = vpop.f32.mrf.mxu0  ;;  %v1203_v60 = vpop.f32.mrf.mxu1  ;;  %v5069_v40 = vsel %vm4581_vm1, 4294967295, %v5068_v40 }
 0x1b0   : > { %v1236_v43 = vadd.f32 %v1189_v52, %v1144_v17  ;;  %v1237_v44 = vadd.f32 %v1203_v60, %v1145_v18  ;;  %v862_v17 = vadd.f32 %v4484_v63, %v769_v48  ;;  %v5065_v18 = vmov 0  ;;  %5070 = vst [vmem:[#allocation14_spill] sm:$0xff] %v5069_v40 }
 0x1b1   : > { %v5066_v18 = vsel %vm4575_vm0, 4294967295, %v5065_v18  ;;  %v976_v60 = vadd.f32 %v4505_v14, %v861_v39  ;;  %v3864_v39 = vld [vmem:[#allocation2 + $0x2c] sm:$0xf0] }
 0x1b2   : > { %v1244_v28 = vmax.f32 %v1236_v43, 0.0  ;;  %v1245_v33 = vmax.f32 %v1237_v44, 0.0  ;;  %5067 = vst [vmem:[#allocation13_spill] sm:$0xff] %v5066_v18  ;;  %v977_v31 = vadd.f32 %v4507_v19, %v862_v17 }
 0x1b3   : > { %v1063_v63 = vadd.f32 %v4519_v36, %v976_v60 }
 0x1b4   : > { %v1260_v53 = vsel %vm4535_vm10, %v1244_v28, 0.0  ;;  %v1261_v0 = vsel %vm4539_vm11, %v1245_v33, 0.0  ;;  %v1064_v43 = vadd.f32 %v4521_v37, %v977_v31 }
 0x1b5   : > { %v1268_v1 = vpack.c.bf16 %v1261_v0, %v1260_v53  ;;  %v1127_v6 = vpop.f32.mrf.mxu2  ;;  %v1141_v9 = vpop.f32.mrf.mxu3 }
 0x1b6   : > { %v1150_v28 = vadd.f32 %v1127_v6, %v1063_v63  ;;  %v1151_v33 = vadd.f32 %v1141_v9, %v1064_v43  ;;  %v3879_v63 = vld [vmem:[#allocation2 + $0x40] sm:$0xf0] }
 0x1b7   : > { %1272 = vst [vmem:[#allocation2 + $0xc] sm:$0xff] %v1268_v1  ;;  %v1191_v10 = vpop.f32.mrf.mxu0  ;;  %v1205_v29 = vpop.f32.mrf.mxu1 }
 0x1b8   : > { %v1240_v4 = vadd.f32 %v1191_v10, %v1148_v22  ;;  %v1241_v47 = vadd.f32 %v1205_v29, %v1149_v23 }
 0x1ba   : > { %v1248_v42 = vmax.f32 %v1240_v4, 0.0  ;;  %v1249_v49 = vmax.f32 %v1241_v47, 0.0  ;;  %v4609_v47 = vpop.permute.xlu2 %1324 }
 0x1bb   : > { %v1333_v59 = vsel %vm1332_vm3, %v1323_v58, %v4609_v47  ;;  %v3617_v58 = vld [vmem:[#allocation2 + $0x20] sm:$0xf] }
 0x1bc   : > { %v1264_v54 = vsel %vm4535_vm10, %v1248_v42, 0.0  ;;  %v1265_v55 = vsel %vm4539_vm11, %v1249_v49, 0.0  ;;  %1351 = vmatpush.bf16.msrb.mxu0 %v1333_v59 }
 0x1bd   : > { %v1270_v25 = vpack.c.bf16 %v1265_v55, %v1264_v54  ;;  %v1217_v5 = vpop.f32.mrf.mxu2  ;;  %v1231_v26 = vpop.f32.mrf.mxu3 }
 0x1be   : > { %v1238_v52 = vadd.f32 %v1217_v5, %v1146_v7  ;;  %v1239_v51 = vadd.f32 %v1231_v26, %v1147_v8  ;;  %v3857_v56 = vld [vmem:[#allocation2 + $0x10] sm:$0xf]  ;;  %v3465_v24 = vld [vmem:[#allocation2 + $0xc] sm:$0xf]  ;;  %v3481_v26 = vld [vmem:[#allocation2 + $0x8] sm:$0xf] }
 0x1bf   : > { %1274 = vst [vmem:[#allocation2 + $0x34] sm:$0xff] %v1270_v25  ;;  %v3509_v19 = vld [vmem:[#allocation2 + $0x10] sm:$0xf]  ;;  %v3866_v22 = vld [vmem:[#allocation2 + $0xc] sm:$0xf]  ;;  %3475 = vmatmul.msk.bf16.vlgmr.msrb.gmra.mxu0 %vm438_vm2, %v5072_v27 }
 0x1c0   : > { %v1246_v62 = vmax.f32 %v1238_v52, 0.0  ;;  %v1247_v32 = vmax.f32 %v1239_v51, 0.0  ;;  %v3875_v50 = vld [vmem:[#allocation2 + $0x10] sm:$0xf]  ;;  %v3549_v25 = vld [vmem:[#allocation2 + $0xc] sm:$0xf]  ;;  %v3482_v52 = vor.u32 %v3864_v39, %v3481_v26 }
 0x1c2   : > { %v1262_v44 = vsel %vm4575_vm0, %v1246_v62, 0.0  ;;  %v1263_v12 = vsel %vm4581_vm1, %v1247_v32, 0.0  ;;  %1444 = vmatpush.bf16.msra.mxu0 %v3482_v52  ;;  %v4624_v31 = vpop.permute.xlu2 %1412  ;;  %v3565_v32 = vld [vmem:[#allocation2 + $0x1c] sm:$0xf] }
 0x1c3   : > { %v1269_v13 = vpack.c.bf16 %v1263_v12, %v1262_v44  ;;  %v3566_v12 = vor.u32 %v3879_v63, %v3565_v32 }
 0x1c5   : > { %1273 = vst [vmem:[#allocation2 + $0x14] sm:$0xff] %v1269_v13  ;;  %v1219_v14 = vpop.f32.mrf.mxu2  ;;  %v1233_v57 = vpop.f32.mrf.mxu3 }
 0x1c6   : > { %v1242_v38 = vadd.f32 %v1219_v14, %v1150_v28  ;;  %v1243_v45 = vadd.f32 %v1233_v57, %v1151_v33  ;;  %v3467_v36 = vld [vmem:[#allocation2 + $0x34] sm:$0xf0]  ;;  %v3859_v37 = vld [vmem:[#allocation2 + $0x30] sm:$0xf0]  ;;  %v3601_v14 = vld [vmem:[#allocation2 + $0x10] sm:$0xf] }
 0x1c7   : > { %v3869_v46 = vld [vmem:[#allocation2 + $0x34] sm:$0xf0]  ;;  %v3470_v53 = vor.u32 %v3857_v56, %v3467_v36  ;;  %v3466_v2 = vor.u32 %v3859_v37, %v3465_v24  ;;  %v3503_v16 = vld [vmem:[#allocation2 + $0x30] sm:$0xf0]  ;;  %v3885_v24 = vld [vmem:[#allocation2 + $0x1c] sm:$0xf] }
 0x1c8   : > { %v3510_v0 = vor.u32 %v3869_v46, %v3509_v19  ;;  %v1250_v3 = vmax.f32 %v1242_v38, 0.0  ;;  %v1251_v1 = vmax.f32 %v1243_v45, 0.0  ;;  %v3506_v23 = vor.u32 %v3866_v22, %v3503_v16  ;;  %v3551_v42 = vld [vmem:[#allocation2 + $0x34] sm:$0xf0]  ;;  %v3877_v8 = vld [vmem:[#allocation2 + $0x30] sm:$0xf0] }
 0x1c9   : > { %1328 = vrot.lane.b32.xlu0 %v3470_v53, %s4118_s23  ;;  %1326 = vrot.lane.b32.xlu1 %v3466_v2, %s4118_s23  ;;  %v3554_v54 = vor.u32 %v3875_v50, %v3551_v42  ;;  %v3550_v5 = vor.u32 %v3877_v8, %v3549_v25  ;;  %v3886_v56 = vld [vmem:[#allocation2 + $0x34] sm:$0xf0]  ;;  %v1276_v19 = vld [vmem:[%s5039_s4] sm:$0xff]  ;;  %v1277_v36 = vld [vmem:[%s5039_s4 + $0x8] sm:$0xff] }
 0x1ca   : > { %1622 = vrot.lane.b32.xlu2 %v3510_v0, %s4118_s23  ;;  %v1266_v6 = vsel %vm4575_vm0, %v1250_v3, 0.0  ;;  %v1267_v9 = vsel %vm4581_vm1, %v1251_v1, 0.0  ;;  %v3602_v57 = vor.u32 %v3886_v56, %v3601_v14  ;;  %v3611_v38 = vld [vmem:[#allocation2 + $0x40] sm:$0xf0]  ;;  %v1531_v46 = vpop.permute.xlu2 %1530  ;;  %v3483_v53 = vld [vmem:[#allocation2 + $0x30] sm:$0xf0] }
 0x1cb   : > { %v1271_v15 = vpack.c.bf16 %v1267_v9, %v1266_v6  ;;  %v3614_v45 = vor.u32 %v3885_v24, %v3611_v38  ;;  %v3862_v1 = vld [vmem:[#allocation2 + $0xc] sm:$0xf]  ;;  %v3489_v6 = vld [vmem:[#allocation2 + $0x10] sm:$0xf]  ;;  %v3531_v26 = vld [vmem:[#allocation2 + $0x34] sm:$0xf0] }
 0x1cc   : > { %v3517_v34 = vld [vmem:[#allocation2 + $0x18] sm:$0xf]  ;;  %v3473_v10 = vld [vmem:[#allocation2 + $0x14] sm:$0xf]  ;;  %v3486_v16 = vor.u32 %v3862_v1, %v3483_v53  ;;  %v3529_v8 = vld [vmem:[#allocation2 + $0xc] sm:$0xf] }
 0x1cd   : > { %1275 = vst [vmem:[#allocation2 + $0x3c] sm:$0xff] %v1271_v15  ;;  %v3557_v48 = vld [vmem:[#allocation2 + $0x14] sm:$0xf]  ;;  %v3876_v51 = vld [vmem:[#allocation2 + $0x18] sm:$0xf] }
 0x1ce   : > { %v3867_v7 = vld [vmem:[#allocation2 + $0x14] sm:$0xf]  ;;  %v3609_v28 = vld [vmem:[#allocation2 + $0x18] sm:$0xf]  ;;  %v3577_v1 = vld [vmem:[#allocation2 + $0x10] sm:$0xf] }
 0x1cf   : > { %3495 = vmatmul.msk.bf16.vlgmr.msra.gmra.mxu0 %vm438_vm2, %v4624_v31  ;;  %v3884_v43 = vld [vmem:[#allocation2 + $0x14] sm:$0xf]  ;;  %v3872_v14 = vld [vmem:[#allocation2 + $0x18] sm:$0xf] }
 0x1d1   : > { %1532 = vrot.lane.b32.xlu0 %v3506_v23, %s4119_s16 }
 0x1d2   : > { %v4650_v37 = vpop.permute.xlu2 %1507 }
 0x1d4   : > { %v3870_v35 = vld [vmem:[#allocation2 + $0x3c] sm:$0xf0]  ;;  %v3860_v29 = vld [vmem:[#allocation2 + $0x38] sm:$0xf0] }
 0x1d5   : > { %v3518_v20 = vor.u32 %v3870_v35, %v3517_v34  ;;  %v3474_v30 = vor.u32 %v3860_v29, %v3473_v10  ;;  %v3878_v4 = vld [vmem:[#allocation2 + $0x38] sm:$0xf0]  ;;  %v3559_v17 = vld [vmem:[#allocation2 + $0x3c] sm:$0xf0] }
 0x1d6   : > { %v3558_v41 = vor.u32 %v3878_v4, %v3557_v48  ;;  %v3511_v49 = vld [vmem:[#allocation2 + $0x38] sm:$0xf0]  ;;  %v3562_v60 = vor.u32 %v3876_v51, %v3559_v17  ;;  %v3887_v13 = vld [vmem:[#allocation2 + $0x3c] sm:$0xf0]  ;;  %v3888_v48 = vld [vmem:[#allocation2 + $0x44] sm:$0xf0] }
 0x1d7   : > { %1538 = vrot.lane.b32.xlu2 %v3518_v20, %s4119_s16  ;;  %1330 = vrot.lane.b32.xlu1 %v3474_v30, %s4118_s23  ;;  %v3514_v55 = vor.u32 %v3867_v7, %v3511_v49  ;;  %v3603_v62 = vld [vmem:[#allocation2 + $0x38] sm:$0xf0]  ;;  %v3610_v33 = vor.u32 %v3887_v13, %v3609_v28  ;;  %v3618_v59 = vor.u32 %v3888_v48, %v3617_v58  ;;  %v3873_v7 = vld [vmem:[#allocation2 + $0x30] sm:$0xf0]  ;;  %v3871_v17 = vld [vmem:[#allocation2 + $0x10] sm:$0xf] }
 0x1d8   : > { %v3606_v44 = vor.u32 %v3884_v43, %v3603_v62  ;;  %v3491_v10 = vld [vmem:[#allocation2 + $0x38] sm:$0xf0]  ;;  %v3530_v25 = vor.u32 %v3873_v7, %v3529_v8  ;;  %v3534_v52 = vor.u32 %v3871_v17, %v3531_v26  ;;  %v3889_v17 = vld [vmem:[%s5038_s3 + $0x8] sm:$0xf0] }
 0x1d9   : > { %1618 = vrot.lane.b32.xlu0 %v5071_v21, %s4118_s23  ;;  %v3881_v8 = vld [vmem:[#allocation2 + $0x1c] sm:$0xf] }
 0x1df   : > { %1626 = vrot.lane.b32.xlu2 %v3518_v20, %s4118_s23  ;;  %1534 = vrot.lane.b32.xlu1 %v3510_v0, %s4119_s16  ;;  %v3865_v0 = vld [vmem:[#allocation2 + $0x34] sm:$0xf0]  ;;  %v3863_v20 = vld [vmem:[#allocation2 + $0x14] sm:$0xf] }
 0x1e0   : > { %v3490_v22 = vor.u32 %v3865_v0, %v3489_v6  ;;  %v3494_v21 = vor.u32 %v3863_v20, %v3491_v10  ;;  %v3882_v0 = vld [vmem:[#allocation2 + $0x34] sm:$0xf0]  ;;  %v3579_v20 = vld [vmem:[#allocation2 + $0x38] sm:$0xf0] }
 0x1e1   : > { %1616 = vrot.lane.b32.xlu0 %v5072_v27, %s4112_s14  ;;  %v3578_v6 = vor.u32 %v3882_v0, %v3577_v1 }
 0x1e7   : > { %1829 = vrot.lane.b32.xlu2 %v3558_v41, %s4119_s16  ;;  %1620 = vrot.lane.b32.xlu1 %v3506_v23, %s4118_s23 }
 0x1e9   : > { %1707 = vrot.lane.b32.xlu0 %v5072_v27, %s4107_s20 }
 0x1ef   : > { %1914 = vrot.lane.b32.xlu2 %v3554_v54, %s4118_s23  ;;  %1536 = vrot.lane.b32.xlu1 %v3514_v55, %s4119_s16 }
 0x1f1   : > { %1825 = vrot.lane.b32.xlu0 %v3550_v5, %s4119_s16 }
 0x1f7   : > { %1831 = vrot.lane.b32.xlu2 %v3562_v60, %s4119_s16  ;;  %1624 = vrot.lane.b32.xlu1 %v3514_v55, %s4118_s23 }
 0x1f9   : > { %1802 = vrot.lane.b32.xlu0 %v5072_v27, %s4114_s26 }
 0x1ff   : > { %1918 = vrot.lane.b32.xlu2 %v3562_v60, %s4118_s23  ;;  %1827 = vrot.lane.b32.xlu1 %v3554_v54, %s4119_s16 }
 0x201   : > { %1916 = vrot.lane.b32.xlu0 %v3558_v41, %s4118_s23 }
 0x207   : > { %2126 = vrot.lane.b32.xlu2 %v3606_v44, %s4119_s16  ;;  %1912 = vrot.lane.b32.xlu1 %v3550_v5, %s4118_s23  ;;  %v3537_v44 = vld [vmem:[#allocation2 + $0x14] sm:$0xf] }
 0x209   : > { %1833 = vrot.lane.b32.xlu0 %v3566_v12, %s4119_s16 }
 0x20f   : > { %1910 = vrot.lane.b32.xlu1 %v5072_v27, %s4115_s10  ;;  %2132 = vrot.lane.b32.xlu2 %v3618_v59, %s4119_s16  ;;  %v3883_v59 = vld [vmem:[#allocation2 + $0x3c] sm:$0xf0] }
 0x211   : > { %1920 = vrot.lane.b32.xlu0 %v3566_v12, %s4118_s23  ;;  %s4121_s23 = smov 120  }
 0x217   : > { %2001 = vrot.lane.b32.xlu1 %v5072_v27, %s4116_s21 }
 0x219   : > { %2128 = vrot.lane.b32.xlu0 %v3610_v33, %s4119_s16  ;;  %v3539_v33 = vld [vmem:[#allocation2 + $0x3c] sm:$0xf0] }
 0x21f   : > { %2124 = vrot.lane.b32.xlu1 %v3602_v57, %s4119_s16  ;;  %v3542_v57 = vor.u32 %v3872_v14, %v3539_v33 }
 0x221   : > { %1280 = vperm.xlu0 %4004, %v1276_v19  }
 0x224   : > { %v1623_v23 = vpop.permute.xlu2 %1622 }
 0x227   : > { %2130 = vrot.lane.b32.xlu1 %v3614_v45, %s4119_s16 }
 0x22f   : > { %1285 = vperm.xlu1 %4005, %v1277_v36  }
 0x231   : > { %v1539_v4 = vpop.permute.xlu2 %1538 }
 0x239   : > { %v1627_v50 = vpop.permute.xlu2 %1626 }
 0x23b   : > { %v1329_v2 = vpop.permute.xlu0 %1328  ;;  %v1327_v3 = vpop.permute.xlu1 %1326 }
 0x23c   : > { %v1334_v9 = vsel %vm1332_vm3, %v4609_v47, %v1327_v3  ;;  %v1335_v15 = vsel %vm1332_vm3, %v1327_v3, %v1329_v2 }
 0x23d   : > { %1365 = vmatpush.bf16.msrb.mxu1 %v1334_v9  ;;  %1379 = vmatpush.bf16.msrb.mxu2 %v1335_v15  ;;  %v1353_v9 = vpop.f32.mrf.mxu0 }
 0x240   : > { %3476 = vmatmul.msk.bf16.vlgmr.msrb.gmra.mxu1 %vm438_vm2, %v5072_v27  ;;  %3477 = vmatmul.msk.bf16.vlgmr.msrb.gmra.mxu2 %vm438_vm2, %v5072_v27 }
 0x241   : > { %1458 = vmatpush.bf16.msra.mxu1 %v3486_v16  ;;  %1472 = vmatpush.bf16.msra.mxu2 %v3490_v22  ;;  %v1830_v39 = vpop.permute.xlu2 %1829 }
 0x243   : > { %v1533_v34 = vpop.permute.xlu0 %1532 }
 0x244   : > { %v1541_v35 = vsel %vm1540_vm4, %v1531_v46, %v1533_v34 }
 0x245   : > { %1559 = vmatpush.bf16.msrb.mxu0 %v1541_v35  ;;  %v4714_v10 = vpop.f32.mrf.mxu0 }
 0x248   : > { %3519 = vmatmul.msk.bf16.vlgmr.msrb.gmra.mxu0 %vm438_vm2, %v4650_v37 }
 0x249   : > { %v1331_v29 = vpop.permute.xlu1 %1330  ;;  %v1915_v63 = vpop.permute.xlu2 %1914 }
 0x24a   : > { %v1336_v30 = vsel %vm1332_vm3, %v1329_v2, %v1331_v29 }
 0x24b   : > { %v1619_v47 = vpop.permute.xlu0 %1618  ;;  %1393 = vmatpush.bf16.msrb.mxu3 %v1336_v30 }
 0x24e   : > { %3478 = vmatmul.msk.bf16.vlgmr.msrb.gmra.mxu3 %vm438_vm2, %v5072_v27 }
 0x24f   : > { %1486 = vmatpush.bf16.msra.mxu3 %v3494_v21  ;;  %v3880_v21 = vld [vmem:[#allocation2 + $0x14] sm:$0xf] }
 0x250   : > { %3496 = vmatmul.msk.bf16.vlgmr.msra.gmra.mxu1 %vm438_vm2, %v4624_v31  ;;  %3497 = vmatmul.msk.bf16.vlgmr.msra.gmra.mxu2 %vm438_vm2, %v4624_v31 }
 0x251   : > { %v1535_v41 = vpop.permute.xlu1 %1534  ;;  %v1832_v45 = vpop.permute.xlu2 %1831 }
 0x252   : > { %v1542_v42 = vsel %vm1540_vm4, %v1533_v34, %v1535_v41  ;;  %v1837_v46 = vsel %vm1540_vm4, %v1830_v39, %v1832_v45 }
 0x253   : > { %v4671_v49 = vpop.permute.xlu0 %1616  ;;  %1573 = vmatpush.bf16.msrb.mxu1 %v1542_v42  ;;  %v1446_v42 = vpop.f32.mrf.mxu0 }
 0x259   : > { %v1621_v27 = vpop.permute.xlu1 %1620 }
 0x25a   : > { %v1628_v54 = vsel %vm1332_vm3, %v1619_v47, %v1621_v27  ;;  %v1629_v55 = vsel %vm1332_vm3, %v1621_v27, %v1623_v23 }
 0x25b   : > { %v4675_v5 = vpop.permute.xlu0 %1707  ;;  %1646 = vmatpush.bf16.msra.mxu0 %v1628_v54  ;;  %1660 = vmatpush.bf16.msra.mxu1 %v1629_v55  ;;  %v3587_v54 = vld [vmem:[#allocation2 + $0x40] sm:$0xf0] }
 0x25c   : > { %v3590_v55 = vor.u32 %v3881_v8, %v3587_v54 }
 0x25e   : > { %3498 = vmatmul.msk.bf16.vlgmr.msra.gmra.mxu3 %vm438_vm2, %v4624_v31  ;;  %3523 = vmatmul.msk.bf16.vlgmr.msra.gmra.mxu0 %vm438_vm2, %v4671_v49  ;;  %v3874_v31 = vld [vmem:[#allocation2 + $0x38] sm:$0xf0] }
 0x25f   : > { %1739 = vmatpush.bf16.msrb.mxu0 %v3530_v25  ;;  %v3538_v28 = vor.u32 %v3874_v31, %v3537_v44 }
 0x260   : > { %3520 = vmatmul.msk.bf16.vlgmr.msrb.gmra.mxu1 %vm438_vm2, %v4650_v37 }
 0x261   : > { %v1537_v51 = vpop.permute.xlu1 %1536  ;;  %1753 = vmatpush.bf16.msrb.mxu1 %v3534_v52 }
 0x262   : > { %v1543_v60 = vsel %vm1540_vm4, %v1535_v41, %v1537_v51  ;;  %v1544_v62 = vsel %vm1540_vm4, %v1537_v51, %v1539_v4  ;;  %v3582_v4 = vor.u32 %v3880_v21, %v3579_v20 }
 0x263   : > { %v1826_v32 = vpop.permute.xlu0 %1825  ;;  %1587 = vmatpush.bf16.msrb.mxu2 %v1543_v60  ;;  %1601 = vmatpush.bf16.msrb.mxu3 %v1544_v62  ;;  %v4743_v62 = vpop.f32.mrf.mxu0 }
 0x266   : > { %3521 = vmatmul.msk.bf16.vlgmr.msrb.gmra.mxu2 %vm438_vm2, %v4650_v37 }
 0x269   : > { %v1625_v43 = vpop.permute.xlu1 %1624 }
 0x26a   : > { %v1630_v12 = vsel %vm1332_vm3, %v1623_v23, %v1625_v43  ;;  %v1631_v13 = vsel %vm1332_vm3, %v1625_v43, %v1627_v50  ;;  %v1919_v23 = vpop.permute.xlu2 %1918  ;;  %v3585_v50 = vld [vmem:[#allocation2 + $0x18] sm:$0xf] }
 0x26b   : > { %v4689_v56 = vpop.permute.xlu0 %1802  ;;  %1674 = vmatpush.bf16.msra.mxu2 %v1630_v12  ;;  %1688 = vmatpush.bf16.msra.mxu3 %v1631_v13  ;;  %v3586_v7 = vor.u32 %v3883_v59, %v3585_v50 }
 0x26e   : > { %3522 = vmatmul.msk.bf16.vlgmr.msrb.gmra.mxu3 %vm438_vm2, %v4650_v37  ;;  %3543 = vmatmul.msk.bf16.vlgmr.msrb.gmra.mxu0 %vm438_vm2, %v4675_v5 }
 0x26f   : > { %1767 = vmatpush.bf16.msrb.mxu2 %v3538_v28  ;;  %1781 = vmatpush.bf16.msrb.mxu3 %v3542_v57 }
 0x270   : > { %3524 = vmatmul.msk.bf16.vlgmr.msra.gmra.mxu1 %vm438_vm2, %v4671_v49 }
 0x271   : > { %v1828_v19 = vpop.permute.xlu1 %1827 }
 0x272   : > { %v1835_v24 = vsel %vm1540_vm4, %v1826_v32, %v1828_v19  ;;  %v1836_v38 = vsel %vm1540_vm4, %v1828_v19, %v1830_v39  ;;  %v2127_v47 = vpop.permute.xlu2 %2126  ;;  %v3597_v39 = vld [vmem:[%s5038_s3 + $0x4] sm:$0xf] }
 0x273   : > { %v1917_v36 = vpop.permute.xlu0 %1916  ;;  %1853 = vmatpush.bf16.msra.mxu0 %v1835_v24  ;;  %1867 = vmatpush.bf16.msra.mxu1 %v1836_v38  ;;  %v3598_v52 = vor.u32 %v3889_v17, %v3597_v39 }
 0x274   : > { %v1923_v15 = vsel %vm1332_vm3, %v1915_v63, %v1917_v36  ;;  %v1924_v34 = vsel %vm1332_vm3, %v1917_v36, %v1919_v23 }
 0x276   : > { %3525 = vmatmul.msk.bf16.vlgmr.msra.gmra.mxu2 %vm438_vm2, %v4671_v49 }
 0x277   : > { %1881 = vmatpush.bf16.msra.mxu2 %v1837_v46 }
 0x279   : > { %v1913_v37 = vpop.permute.xlu1 %1912 }
 0x27a   : > { %v1922_v53 = vsel %vm1332_vm3, %v1913_v37, %v1915_v63  ;;  %v2133_v51 = vpop.permute.xlu2 %2132 }
 0x27b   : > { %v1834_v2 = vpop.permute.xlu0 %1833  ;;  %1940 = vmatpush.bf16.msrb.mxu0 %v1922_v53 }
 0x27c   : > { %v1838_v3 = vsel %vm1540_vm4, %v1832_v45, %v1834_v2 }
 0x27e   : > { %3526 = vmatmul.msk.bf16.vlgmr.msra.gmra.mxu3 %vm438_vm2, %v4671_v49  ;;  %3567 = vmatmul.msk.bf16.vlgmr.msra.gmra.mxu0 %vm438_vm2, %v4689_v56 }
 0x27f   : > { %1895 = vmatpush.bf16.msra.mxu3 %v1838_v3  ;;  %2033 = vmatpush.bf16.msra.mxu0 %v3578_v6 }
 0x280   : > { %3544 = vmatmul.msk.bf16.vlgmr.msrb.gmra.mxu1 %vm438_vm2, %v4675_v5 }
 0x281   : > { %v1911_v16 = vpop.permute.xlu1 %1910  ;;  %1954 = vmatpush.bf16.msrb.mxu1 %v1923_v15 }
 0x283   : > { %v1921_v22 = vpop.permute.xlu0 %1920 }
 0x284   : > { %v1925_v30 = vsel %vm1332_vm3, %v1919_v23, %v1921_v22 }
 0x286   : > { %3545 = vmatmul.msk.bf16.vlgmr.msrb.gmra.mxu2 %vm438_vm2, %v4675_v5 }
 0x287   : > { %1968 = vmatpush.bf16.msrb.mxu2 %v1924_v34 }
 0x289   : > { %v2002_v35 = vpop.permute.xlu1 %2001 }
 0x28b   : > { %v2129_v29 = vpop.permute.xlu0 %2128 }
 0x28c   : > { %v2135_v25 = vsel %vm1540_vm4, %v2127_v47, %v2129_v29 }
 0x28e   : > { %3546 = vmatmul.msk.bf16.vlgmr.msrb.gmra.mxu3 %vm438_vm2, %v4675_v5  ;;  %3571 = vmatmul.msk.bf16.vlgmr.msrb.gmra.mxu0 %vm438_vm2, %v1911_v16 }
 0x28f   : > { %1982 = vmatpush.bf16.msrb.mxu3 %v1925_v30 }
 0x290   : > { %3568 = vmatmul.msk.bf16.vlgmr.msra.gmra.mxu1 %vm438_vm2, %v4689_v56 }
 0x291   : > { %v2125_v58 = vpop.permute.xlu1 %2124  ;;  %2047 = vmatpush.bf16.msra.mxu1 %v3582_v4 }
 0x292   : > { %v2134_v48 = vsel %vm1540_vm4, %v2125_v58, %v2127_v47 }
 0x293   : > { %v1281_v41 = vpop.permute.xlu0 %1280  ;;  %2152 = vmatpush.bf16.msrb.mxu0 %v2134_v48 }
 0x294   : > { %v1400_v49 = vadd.f32 %v1353_v9, %v1281_v41 }
 0x296   : > { %v1493_v27 = vadd.f32 %v1446_v42, %v1400_v49  ;;  %3569 = vmatmul.msk.bf16.vlgmr.msra.gmra.mxu2 %vm438_vm2, %v4689_v56 }
 0x297   : > { %2061 = vmatpush.bf16.msra.mxu2 %v3586_v7 }
 0x299   : > { %v2131_v5 = vpop.permute.xlu1 %2130 }
 0x29a   : > { %v2136_v26 = vsel %vm1540_vm4, %v2129_v29, %v2131_v5  ;;  %v2137_v60 = vsel %vm1540_vm4, %v2131_v5, %v2133_v51 }
 0x29e   : > { %3570 = vmatmul.msk.bf16.vlgmr.msra.gmra.mxu3 %vm438_vm2, %v4689_v56  ;;  %3591 = vmatmul.msk.bf16.vlgmr.msra.gmra.mxu0 %vm438_vm2, %v2002_v35 }
 0x29f   : > { %2075 = vmatpush.bf16.msra.mxu3 %v3590_v55 }
 0x2a0   : > { %3572 = vmatmul.msk.bf16.vlgmr.msrb.gmra.mxu1 %vm438_vm2, %v1911_v16 }
 0x2a1   : > { %2166 = vmatpush.bf16.msrb.mxu1 %v2135_v25 }
 0x2a6   : > { %3573 = vmatmul.msk.bf16.vlgmr.msrb.gmra.mxu2 %vm438_vm2, %v1911_v16 }
 0x2a7   : > { %2180 = vmatpush.bf16.msrb.mxu2 %v2136_v26 }
 0x2ae   : > { %3574 = vmatmul.msk.bf16.vlgmr.msrb.gmra.mxu3 %vm438_vm2, %v1911_v16  ;;  %3619 = vmatmul.msk.bf16.vlgmr.msrb.gmra.mxu0 %vm438_vm2, %v3598_v52 }
 0x2af   : > { %2194 = vmatpush.bf16.msrb.mxu3 %v2137_v60 }
 0x2b0   : > { %3592 = vmatmul.msk.bf16.vlgmr.msra.gmra.mxu1 %vm438_vm2, %v2002_v35 }
 0x2b6   : > { %3593 = vmatmul.msk.bf16.vlgmr.msra.gmra.mxu2 %vm438_vm2, %v2002_v35 }
 0x2bd   : > { %v1367_v32 = vpop.f32.mrf.mxu1 }
 0x2be   : > { %3594 = vmatmul.msk.bf16.vlgmr.msra.gmra.mxu3 %vm438_vm2, %v2002_v35  ;;  %v1401_v13 = vadd.f32 %v1367_v32, %v1281_v41 }
 0x2c0   : > { %3620 = vmatmul.msk.bf16.vlgmr.msrb.gmra.mxu1 %vm438_vm2, %v3598_v52 }
 0x2c3   : > { %v1381_v31 = vpop.f32.mrf.mxu2 }
 0x2c4   : > { %v1402_v14 = vadd.f32 %v1381_v31, %v1281_v41 }
 0x2c5   : > { %v1561_v63 = vpop.f32.mrf.mxu0  ;;  %v4747_v43 = vpop.f32.mrf.mxu1 }
 0x2c6   : > { %v1608_v44 = vadd.f32 %v1561_v63, %v1493_v27  ;;  %3621 = vmatmul.msk.bf16.vlgmr.msrb.gmra.mxu2 %vm438_vm2, %v3598_v52 }
 0x2cb   : > { %v4750_v12 = vpop.f32.mrf.mxu2 }
 0x2cd   : > { %v1460_v28 = vpop.f32.mrf.mxu1  ;;  %v4753_v57 = vpop.f32.mrf.mxu0 }
 0x2ce   : > { %3622 = vmatmul.msk.bf16.vlgmr.msrb.gmra.mxu3 %vm438_vm2, %v3598_v52  ;;  %v1494_v33 = vadd.f32 %v1460_v28, %v1401_v13  ;;  %v3637_v13 = vld [vmem:[#allocation2 + $0x8] sm:$0xf]  ;;  %v3893_v28 = vld [vmem:[#allocation2 + $0x2c] sm:$0xf0] }
 0x2d1   : > { %v1395_v56 = vpop.f32.mrf.mxu3 }
 0x2d2   : > { %v1403_v0 = vadd.f32 %v1395_v56, %v1281_v41 }
 0x2d3   : > { %v1474_v19 = vpop.f32.mrf.mxu2 }
 0x2d4   : > { %v1495_v24 = vadd.f32 %v1474_v19, %v1402_v14  ;;  %v3638_v14 = vor.u32 %v3893_v28, %v3637_v13 }
 0x2d5   : > { %v4755_v38 = vpop.f32.mrf.mxu1 }
 0x2d6   : > { %2283 = vrot.lane.b32.xlu2 %v3638_v14, %s4120_s29 }
 0x2d9   : > { %v4757_v45 = vpop.f32.mrf.mxu3 }
 0x2db   : > { %v1648_v36 = vpop.f32.mrf.mxu0  ;;  %v4759_v2 = vpop.f32.mrf.mxu2 }
 0x2dc   : > { %v1695_v46 = vadd.f32 %v1648_v36, %v1608_v44 }
 0x2dd   : > { %v1575_v37 = vpop.f32.mrf.mxu1 }
 0x2de   : > { %v1609_v53 = vadd.f32 %v1575_v37, %v1494_v33  ;;  %v3629_v37 = vld [vmem:[#allocation2] sm:$0xf] }
 0x2e1   : > { %v1488_v3 = vpop.f32.mrf.mxu3 }
 0x2e2   : > { %v1496_v1 = vadd.f32 %v1488_v3, %v1403_v0 }
 0x2e3   : > { %v4761_v6 = vpop.f32.mrf.mxu0 }
 0x2e5   : > { %v4763_v9 = vpop.f32.mrf.mxu1 }
 0x2e9   : > { %v4765_v15 = vpop.f32.mrf.mxu3  ;;  %v1589_v16 = vpop.f32.mrf.mxu2 }
 0x2ea   : > { %v1610_v22 = vadd.f32 %v1589_v16, %v1495_v24  ;;  %v1286_v24 = vpop.permute.xlu1 %1285 }
 0x2eb   : > { %v1741_v23 = vpop.f32.mrf.mxu0  ;;  %v1404_v3 = vadd.f32 %v4714_v10, %v1286_v24 }
 0x2ed   : > { %v1662_v34 = vpop.f32.mrf.mxu1 }
 0x2ee   : > { %v1696_v35 = vadd.f32 %v1662_v34, %v1609_v53  ;;  %v3892_v53 = vld [vmem:[#allocation2 + $0x24] sm:$0xf0]  ;;  %v1497_v34 = vadd.f32 %v4743_v62, %v1404_v3 }
 0x2ef   : > { %v3630_v0 = vor.u32 %v3892_v53, %v3629_v37 }
 0x2f0   : > { %v1612_v13 = vadd.f32 %v4753_v57, %v1497_v34 }
 0x2f1   : > { %v4767_v29 = vpop.f32.mrf.mxu2  ;;  %v1603_v20 = vpop.f32.mrf.mxu3  ;;  %2279 = vrot.lane.b32.xlu2 %v3630_v0, %s4120_s29 }
 0x2f2   : > { %v1611_v30 = vadd.f32 %v1603_v20, %v1496_v1  ;;  %v1699_v37 = vadd.f32 %v4761_v6, %v1612_v13 }
 0x2f3   : > { %v1743_v21 = vpop.f32.mrf.mxu0 }
 0x2f5   : > { %v1664_v4 = vpop.f32.mrf.mxu1 }
 0x2f9   : > { %v4769_v47 = vpop.f32.mrf.mxu3  ;;  %v1676_v58 = vpop.f32.mrf.mxu2 }
 0x2fa   : > { %v4771_v48 = vadd.f32 %v1676_v58, %v1610_v22  ;;  %v1788_v22 = vadd.f32 %v1741_v23, %v1695_v46 }
 0x2fb   : > { %v1855_v59 = vpop.f32.mrf.mxu0 }
 0x2fc   : > { %v1902_v20 = vadd.f32 %v1855_v59, %v1788_v22  ;;  %v1792_v59 = vadd.f32 %v1743_v21, %v1699_v37 }
 0x2fd   : > { %v1755_v41 = vpop.f32.mrf.mxu1 }
 0x2fe   : > { %v1789_v28 = vadd.f32 %v1755_v41, %v1696_v35 }
 0x301   : > { %v4773_v42 = vpop.f32.mrf.mxu2  ;;  %v1690_v49 = vpop.f32.mrf.mxu3 }
 0x302   : > { %v4775_v50 = vadd.f32 %v1690_v49, %v1611_v30  ;;  %v1405_v49 = vadd.f32 %v4747_v43, %v1286_v24 }
 0x303   : > { %v1857_v7 = vpop.f32.mrf.mxu0 }
 0x304   : > { %v1498_v10 = vadd.f32 %v4755_v38, %v1405_v49  ;;  %v1906_v43 = vadd.f32 %v1857_v7, %v1792_v59 }
 0x305   : > { %v1757_v27 = vpop.f32.mrf.mxu1 }
 0x306   : > { %v1613_v62 = vadd.f32 %v4763_v9, %v1498_v10 }
 0x308   : > { %v1700_v22 = vadd.f32 %v1664_v4, %v1613_v62  ;;  %v1406_v4 = vadd.f32 %v4750_v12, %v1286_v24 }
 0x309   : > { %v4777_v8 = vpop.f32.mrf.mxu3  ;;  %v4779_v54 = vpop.f32.mrf.mxu2 }
 0x30a   : > { %v1793_v35 = vadd.f32 %v1757_v27, %v1700_v22  ;;  %v1790_v7 = vadd.f32 %v4779_v54, %v4771_v48 }
 0x30b   : > { %v1942_v55 = vpop.f32.mrf.mxu0 }
 0x30c   : > { %v1989_v14 = vadd.f32 %v1942_v55, %v1902_v20 }
 0x30d   : > { %v1869_v25 = vpop.f32.mrf.mxu1 }
 0x30e   : > { %v1903_v53 = vadd.f32 %v1869_v25, %v1789_v28 }
 0x311   : > { %v4781_v5 = vpop.f32.mrf.mxu2  ;;  %v4783_v26 = vpop.f32.mrf.mxu3 }
 0x312   : > { %v1791_v48 = vadd.f32 %v4783_v26, %v4775_v50 }
 0x313   : > { %v1944_v17 = vpop.f32.mrf.mxu0 }
 0x314   : > { %v1993_v41 = vadd.f32 %v1944_v17, %v1906_v43 }
 0x315   : > { %v1871_v39 = vpop.f32.mrf.mxu1 }
 0x316   : > { %v1907_v6 = vadd.f32 %v1871_v39, %v1793_v35 }
 0x319   : > { %v4785_v52 = vpop.f32.mrf.mxu3  ;;  %v4787_v51 = vpop.f32.mrf.mxu2 }
 0x31a   : > { %v1904_v39 = vadd.f32 %v4787_v51, %v1790_v7 }
 0x31b   : > { %v2035_v63 = vpop.f32.mrf.mxu0 }
 0x31c   : > { %v2082_v40 = vadd.f32 %v2035_v63, %v1989_v14 }
 0x31d   : > { %v1956_v60 = vpop.f32.mrf.mxu1 }
 0x31e   : > { %v1990_v0 = vadd.f32 %v1956_v60, %v1903_v53 }
 0x321   : > { %v4789_v32 = vpop.f32.mrf.mxu2  ;;  %v4791_v31 = vpop.f32.mrf.mxu3 }
 0x323   : > { %v2037_v19 = vpop.f32.mrf.mxu0 }
 0x324   : > { %v2086_v25 = vadd.f32 %v2037_v19, %v1993_v41  ;;  %v1499_v19 = vadd.f32 %v4759_v2, %v1406_v4 }
 0x325   : > { %v1958_v44 = vpop.f32.mrf.mxu1 }
 0x326   : > { %v1994_v13 = vadd.f32 %v1958_v44, %v1907_v6  ;;  %v1614_v12 = vadd.f32 %v4767_v29, %v1499_v19 }
 0x329   : > { %v4793_v33 = vpop.f32.mrf.mxu3  ;;  %v1970_v56 = vpop.f32.mrf.mxu2 }
 0x32b   : > { %v2154_v30 = vpop.f32.mrf.mxu0 }
 0x32c   : > { %v2201_v3 = vadd.f32 %v2154_v30, %v2082_v40  ;;  %v1407_v30 = vadd.f32 %v4757_v45, %v1286_v24  ;;  %v1905_v45 = vadd.f32 %v4791_v31, %v1791_v48  ;;  %v3902_v48 = vld [vmem:[#allocation2 + $0x28] sm:$0xf0] }
 0x32d   : > { %v2049_v36 = vpop.f32.mrf.mxu1 }
 0x32e   : > { %v2083_v18 = vadd.f32 %v2049_v36, %v1990_v0  ;;  %v2209_v55 = vmax.f32 %v2201_v3, 0.0  ;;  %v1991_v36 = vadd.f32 %v1970_v56, %v1904_v39  ;;  %v1500_v51 = vadd.f32 %v4765_v15, %v1407_v30 }
 0x32f   : > { %v1701_v56 = vadd.f32 %v4773_v42, %v1614_v12  ;;  %v3673_v12 = vld [vmem:[#allocation2 + $0x4] sm:$0xf] }
 0x330   : > { %v2217_v9 = vsel %vm4535_vm10, %v2209_v55, 0.0  ;;  %v1615_v29 = vadd.f32 %v4769_v47, %v1500_v51  ;;  %v3675_v51 = vld [vmem:[#allocation2 + $0x2c] sm:$0xf0] }
 0x331   : > { %v4797_v1 = vpop.f32.mrf.mxu2  ;;  %v4799_v16 = vpop.f32.mrf.mxu3  ;;  %v1794_v53 = vadd.f32 %v4781_v5, %v1701_v56 }
 0x332   : > { %v1992_v50 = vadd.f32 %v4799_v16, %v1905_v45  ;;  %v1702_v15 = vadd.f32 %v4777_v8, %v1615_v29 }
 0x333   : > { %v2156_v34 = vpop.f32.mrf.mxu0  ;;  %v1908_v61 = vadd.f32 %v4789_v32, %v1794_v53 }
 0x334   : > { %v2205_v21 = vadd.f32 %v2156_v34, %v2086_v25 }
 0x335   : > { %v2051_v58 = vpop.f32.mrf.mxu1  ;;  %v1995_v31 = vadd.f32 %v4797_v1, %v1908_v61  ;;  %v3697_v61 = vld [vmem:[#allocation2 + $0x8] sm:$0xf] }
 0x336   : > { %v2087_v27 = vadd.f32 %v2051_v58, %v1994_v13  ;;  %v2213_v60 = vmax.f32 %v2205_v21, 0.0  ;;  %v3631_v21 = vld [vmem:[#allocation2 + $0x28] sm:$0xf0] }
 0x338   : > { %v2221_v58 = vsel %vm4535_vm10, %v2213_v60, 0.0 }
 0x339   : > { %v4807_v46 = vpop.f32.mrf.mxu3  ;;  %v2063_v23 = vpop.f32.mrf.mxu2 }
 0x33a   : > { %v2084_v54 = vadd.f32 %v2063_v23, %v1991_v36  ;;  %v1795_v23 = vadd.f32 %v4785_v52, %v1702_v15  ;;  %v3918_v15 = vld [vmem:[#allocation2 + $0x40] sm:$0xf0] }
 0x33c   : > { %v1909_v59 = vadd.f32 %v4793_v33, %v1795_v23 }
 0x33d   : > { %v2168_v57 = vpop.f32.mrf.mxu1 }
 0x33e   : > { %v2202_v38 = vadd.f32 %v2168_v57, %v2083_v18  ;;  %v1996_v32 = vadd.f32 %v4807_v46, %v1909_v59 }
 0x340   : > { %v2210_v63 = vmax.f32 %v2202_v38, 0.0 }
 0x341   : > { %v2065_v20 = vpop.f32.mrf.mxu2  ;;  %v2077_v49 = vpop.f32.mrf.mxu3 }
 0x342   : > { %v2218_v40 = vsel %vm4539_vm11, %v2210_v63, 0.0  ;;  %v2085_v26 = vadd.f32 %v2077_v49, %v1992_v50  ;;  %v2088_v0 = vadd.f32 %v2065_v20, %v1995_v31  ;;  %v3625_v63 = vld [vmem:[%s5040_s5] sm:$0xf]  ;;  %v3895_v20 = vld [vmem:[%s5040_s5 + $0x4] sm:$0xf0] }
 0x343   : > { %v2225_v18 = vpack.c.bf16 %v2218_v40, %v2217_v9  ;;  %v3890_v9 = vld [vmem:[#allocation2 + $0x4] sm:$0xf]  ;;  %v4852_v4 = vor.u32 %v3895_v20, %v3625_v63  ;;  %v3757_v50 = vld [vmem:[#allocation2 + $0x1c] sm:$0xf] }
 0x344   : > { %v3634_v7 = vor.u32 %v3890_v9, %v3631_v21 }
 0x345   : > { %2229 = vst [vmem:[#allocation2 + $0xc] sm:$0xff] %v2225_v18  ;;  %v2170_v17 = vpop.f32.mrf.mxu1 }
 0x346   : > { %v2206_v44 = vadd.f32 %v2170_v17, %v2087_v27 }
 0x348   : > { %v2214_v28 = vmax.f32 %v2206_v44, 0.0 }
 0x349   : > { %v2079_v14 = vpop.f32.mrf.mxu3  ;;  %v2182_v10 = vpop.f32.mrf.mxu2 }
 0x34a   : > { %v2222_v2 = vsel %vm4539_vm11, %v2214_v28, 0.0  ;;  %v2203_v37 = vadd.f32 %v2182_v10, %v2084_v54  ;;  %v2089_v25 = vadd.f32 %v2079_v14, %v1996_v32  ;;  %v3900_v54 = vld [vmem:[#allocation2 + $0x8] sm:$0xf] }
 0x34b   : > { %v2227_v24 = vpack.c.bf16 %v2222_v2, %v2221_v58  ;;  %v3674_v58 = vor.u32 %v3902_v48, %v3673_v12  ;;  %v3678_v2 = vor.u32 %v3900_v54, %v3675_v51  ;;  %v2233_v48 = vld [vmem:[%s5041_s6] sm:$0xff]  ;;  %v2234_v54 = vld [vmem:[%s5041_s6 + $0x8] sm:$0xff] }
 0x34c   : > { %v2211_v11 = vmax.f32 %v2203_v37, 0.0  ;;  %v3681_v22 = vld [vmem:[#allocation2 + $0xc] sm:$0xf]  ;;  %v3645_v8 = vld [vmem:[#allocation2 + $0x10] sm:$0xf] }
 0x34d   : > { %2231 = vst [vmem:[#allocation2 + $0x34] sm:$0xff] %v2227_v24  ;;  %v3891_v33 = vld [vmem:[#allocation2 + $0xc] sm:$0xf]  ;;  %v3705_v44 = vld [vmem:[#allocation2 + $0x10] sm:$0xf] }
 0x34e   : > { %v2219_v16 = vsel %vm4575_vm0, %v2211_v11, 0.0  ;;  %v3901_v36 = vld [vmem:[#allocation2 + $0x10] sm:$0xf]  ;;  %v3758_v11 = vor.u32 %v3918_v15, %v3757_v50  ;;  %v3905_v31 = vld [vmem:[#allocation2 + $0xc] sm:$0xf] }
 0x34f   : > { %v3741_v41 = vld [vmem:[#allocation2 + $0xc] sm:$0xf] }
 0x351   : > { %v2196_v42 = vpop.f32.mrf.mxu3  ;;  %v2184_v47 = vpop.f32.mrf.mxu2 }
 0x352   : > { %v2204_v62 = vadd.f32 %v2196_v42, %v2085_v26  ;;  %v2207_v52 = vadd.f32 %v2184_v47, %v2088_v0  ;;  %v3907_v26 = vld [vmem:[#allocation2 + $0x2c] sm:$0xf0] }
 0x353   : > { %v3698_v23 = vor.u32 %v3907_v26, %v3697_v61  ;;  %v3914_v0 = vld [vmem:[#allocation2 + $0x10] sm:$0xf]  ;;  %v3653_v26 = vld [vmem:[#allocation2 + $0x4] sm:$0xf] }
 0x354   : > { %v2212_v3 = vmax.f32 %v2204_v62, 0.0  ;;  %v3903_v43 = vld [vmem:[#allocation2 + $0x30] sm:$0xf0]  ;;  %v3894_v57 = vld [vmem:[#allocation2 + $0x34] sm:$0xf0]  ;;  %v2215_v49 = vmax.f32 %v2207_v52, 0.0 }
 0x355   : > { %v3639_v35 = vld [vmem:[#allocation2 + $0x30] sm:$0xf0]  ;;  %v3682_v55 = vor.u32 %v3903_v43, %v3681_v22  ;;  %v3646_v38 = vor.u32 %v3894_v57, %v3645_v8  ;;  %v3908_v17 = vld [vmem:[#allocation2 + $0x34] sm:$0xf0]  ;;  %v3781_v43 = vld [vmem:[#allocation2 + $0x20] sm:$0xf] }
 0x356   : > { %v2220_v1 = vsel %vm4581_vm1, %v2212_v3, 0.0  ;;  %v3642_v6 = vor.u32 %v3891_v33, %v3639_v35  ;;  %v2223_v18 = vsel %vm4575_vm0, %v2215_v49, 0.0  ;;  %v3683_v60 = vld [vmem:[#allocation2 + $0x34] sm:$0xf0]  ;;  %v3706_v19 = vor.u32 %v3908_v17, %v3705_v44  ;;  %v3699_v42 = vld [vmem:[#allocation2 + $0x30] sm:$0xf0] }
 0x357   : > { %v2226_v34 = vpack.c.bf16 %v2220_v1, %v2219_v16  ;;  %2491 = vrot.lane.b32.xlu2 %v3682_v55, %s4121_s23  ;;  %2287 = vrot.lane.b32.xlu1 %v3646_v38, %s4120_s29  ;;  %v3686_v30 = vor.u32 %v3901_v36, %v3683_v60  ;;  %v3702_v62 = vor.u32 %v3905_v31, %v3699_v42  ;;  %v3743_v59 = vld [vmem:[#allocation2 + $0x34] sm:$0xf0]  ;;  %v3923_v57 = vld [vmem:[#allocation2 + $0x44] sm:$0xf0]  ;;  %v3916_v52 = vld [vmem:[#allocation2 + $0x30] sm:$0xf0] }
 0x358   : > { %2285 = vrot.lane.b32.xlu0 %v3642_v6, %s4120_s29  ;;  %v3746_v5 = vor.u32 %v3914_v0, %v3743_v59  ;;  %v3782_v35 = vor.u32 %v3923_v57, %v3781_v43  ;;  %v3742_v1 = vor.u32 %v3916_v52, %v3741_v41  ;;  %v3920_v33 = vld [vmem:[#allocation2 + $0x1c] sm:$0xf]  ;;  %v3929_v49 = vld [vmem:[#allocation2 + $0x20] sm:$0xf]  ;;  %v3921_v21 = vld [vmem:[#allocation2 + $0x34] sm:$0xf0] }
 0x359   : > { %2230 = vst [vmem:[#allocation2 + $0x14] sm:$0xff] %v2226_v34  ;;  %v2198_v46 = vpop.f32.mrf.mxu3  ;;  %v3775_v34 = vld [vmem:[#allocation2 + $0x40] sm:$0xf0]  ;;  %v3932_v36 = vld [vmem:[#allocation2 + $0x48] sm:$0xf0] }
 0x35a   : > { %v2208_v13 = vadd.f32 %v2198_v46, %v2089_v25  ;;  %v3778_v20 = vor.u32 %v3920_v33, %v3775_v34  ;;  %v3896_v42 = vld [vmem:[#allocation2 + $0x8] sm:$0xf]  ;;  %v3655_v31 = vld [vmem:[#allocation2 + $0x2c] sm:$0xf0] }
 0x35b   : > { %v3658_v59 = vor.u32 %v3896_v42, %v3655_v31 }
 0x35c   : > { %v2216_v40 = vmax.f32 %v2208_v13, 0.0  ;;  %v3823_v13 = vld [vmem:[#allocation2 + $0x44] sm:$0xf0] }
 0x35d   : > { %v3826_v9 = vor.u32 %v3929_v49, %v3823_v13 }
 0x35e   : > { %v2224_v27 = vsel %vm4581_vm1, %v2216_v40, 0.0  ;;  %v3765_v40 = vld [vmem:[#allocation2 + $0x10] sm:$0xf] }
 0x35f   : > { %v2228_v39 = vpack.c.bf16 %v2224_v27, %v2223_v18  ;;  %2464 = vrot.lane.b32.xlu2 %v4852_v4, %s4110_s17  ;;  %2369 = vrot.lane.b32.xlu1 %v4852_v4, %s4108_s9  ;;  %v3821_v27 = vld [vmem:[#allocation2 + $0x1c] sm:$0xf]  ;;  %s3257_s9 = scalar_lea.sflag [#allocation5], %s4239_s19 }
 0x360   : > { %2281 = vrot.lane.b32.xlu0 %v3634_v7, %s4120_s29  ;;  %v3689_v28 = vld [vmem:[#allocation2 + $0x14] sm:$0xf]  ;;  %v3713_v29 = vld [vmem:[#allocation2 + $0x18] sm:$0xf]  ;;  %v3766_v7 = vor.u32 %v3921_v21, %v3765_v40 }
 0x361   : > { %2232 = vst [vmem:[#allocation2 + $0x3c] sm:$0xff] %v2228_v39  ;;  %v3906_v45 = vld [vmem:[#allocation2 + $0x14] sm:$0xf]  ;;  %v3915_v8 = vld [vmem:[#allocation2 + $0x18] sm:$0xf] }
 0x362   : > { %v3749_v16 = vld [vmem:[#allocation2 + $0x14] sm:$0xf]  ;;  %v3773_v46 = vld [vmem:[#allocation2 + $0x18] sm:$0xf]  ;;  %v3931_v39 = vld [vmem:[#allocation2 + $0x40] sm:$0xf0] }
 0x363   : > { %v3919_v6 = vld [vmem:[#allocation2 + $0x14] sm:$0xf]  ;;  %v3928_v17 = vld [vmem:[#allocation2 + $0x18] sm:$0xf]  ;;  %v3822_v44 = vor.u32 %v3931_v39, %v3821_v27  ;;  %v3721_v27 = vld [vmem:[#allocation2 + $0xc] sm:$0xf] }
 0x364   : > { %v3723_v21 = vld [vmem:[#allocation2 + $0x34] sm:$0xf0]  ;;  %v3910_v39 = vld [vmem:[#allocation2 + $0x10] sm:$0xf] }
 0x367   : > { %2606 = vrot.lane.b32.xlu2 %v3706_v19, %s4120_s29  ;;  %v3829_v19 = vld [vmem:[#allocation2 + $0x24] sm:$0xf] }
 0x368   : > { %v3904_v14 = vld [vmem:[#allocation2 + $0x38] sm:$0xf0]  ;;  %2493 = vrot.lane.b32.xlu0 %v3686_v30, %s4121_s23  ;;  %v3909_v24 = vld [vmem:[#allocation2 + $0x3c] sm:$0xf0]  ;;  %v3830_v30 = vor.u32 %v3932_v36, %v3829_v19 }
 0x369   : > { %v3690_v10 = vor.u32 %v3904_v14, %v3689_v28  ;;  %v3707_v56 = vld [vmem:[#allocation2 + $0x38] sm:$0xf0]  ;;  %v3714_v53 = vor.u32 %v3909_v24, %v3713_v29  ;;  %v3751_v3 = vld [vmem:[#allocation2 + $0x3c] sm:$0xf0]  ;;  %v3813_v14 = vld [vmem:[#allocation2 + $0x14] sm:$0xf] }
 0x36a   : > { %v3710_v37 = vor.u32 %v3906_v45, %v3707_v56  ;;  %v3917_v47 = vld [vmem:[#allocation2 + $0x38] sm:$0xf0]  ;;  %v3754_v32 = vor.u32 %v3915_v8, %v3751_v3  ;;  %v3922_v38 = vld [vmem:[#allocation2 + $0x3c] sm:$0xf0]  ;;  %v3663_v56 = vld [vmem:[#allocation2 + $0x34] sm:$0xf0] }
 0x36b   : > { %2495 = vrot.lane.b32.xlu1 %v3690_v10, %s4121_s23  ;;  %v3750_v22 = vor.u32 %v3917_v47, %v3749_v16  ;;  %v3767_v55 = vld [vmem:[#allocation2 + $0x38] sm:$0xf0]  ;;  %v3774_v63 = vor.u32 %v3922_v38, %v3773_v46  ;;  %v3815_v18 = vld [vmem:[#allocation2 + $0x3c] sm:$0xf0]  ;;  %v2284_v10 = vpop.permute.xlu2 %2283  ;;  %v3897_v29 = vld [vmem:[#allocation2 + $0x10] sm:$0xf] }
 0x36c   : > { %v3770_v25 = vor.u32 %v3919_v6, %v3767_v55  ;;  %v3818_v60 = vor.u32 %v3928_v17, %v3815_v18  ;;  %v3930_v28 = vld [vmem:[#allocation2 + $0x38] sm:$0xf0]  ;;  %v3666_v61 = vor.u32 %v3897_v29, %v3663_v56  ;;  %v3731_v33 = vld [vmem:[#allocation2 + $0x3c] sm:$0xf0]  ;;  %v3729_v46 = vld [vmem:[#allocation2 + $0x14] sm:$0xf] }
 0x36d   : > { %v3814_v12 = vor.u32 %v3930_v28, %v3813_v14  ;;  %v3913_v38 = vld [vmem:[#allocation2 + $0x38] sm:$0xf0] }
 0x36f   : > { %2579 = vrot.lane.b32.xlu2 %v4852_v4, %s4112_s14 }
 0x370   : > { %2487 = vrot.lane.b32.xlu0 %v3674_v58, %s4121_s23 }
 0x373   : > { %2489 = vrot.lane.b32.xlu1 %v3678_v2, %s4121_s23  ;;  %v2280_v51 = vpop.permute.xlu2 %2279  ;;  %v3899_v2 = vld [vmem:[#allocation2 + $0x30] sm:$0xf0] }
 0x377   : > { %2691 = vrot.lane.b32.xlu2 %v4852_v4, %s4107_s20  ;;  %s3271_s20 = sshll.u32 %s3268_s18, 4  ;;  %s3272_s20 = int_to_ptr.hbm [resolvable:$true] %s3271_s20 }
 0x378   : > { %2608 = vrot.lane.b32.xlu0 %v3710_v37, %s4120_s29  ;;  %v3661_v37 = vld [vmem:[#allocation2 + $0xc] sm:$0xf]  ;;  %s4050_s17 = sshra.s32 %s3272_s20, 4  ;;  %s4051_s17 = int_to_ptr.hbm [resolvable:$true] %s4050_s17 }
 0x379   : > { %v3662_v15 = vor.u32 %v3899_v2, %v3661_v37  ;;  %s4052_s14 = scalar_lea.hbm %s4051_s17, 64  ;;  %p4057_p3 = scmp.lt.s32.totalorder %s4051_s17, %s5042_s7 }
 0x37a   : > { %p4053_p6 = scmp.ne.s32.totalorder %s4051_s17, %s4052_s14  ;;  %p4058_p4 = scmp.lt.s32.totalorder %s4056_s11, %s4052_s14 }
 0x37b   : > { %2610 = vrot.lane.b32.xlu1 %v3714_v53, %s4120_s29 }
 0x37c   : > { %p4054_p13 = pnand %p4053_p6, %p4209_p11  ;;  %p4059_p5 = por %p4058_p4, %p4057_p3 }
 0x37e   : > { %p4055_p2 = pneg %p4054_p13 }
 0x37f   : > { %2817 = vrot.lane.b32.xlu2 %v3758_v11, %s4121_s23 }
 0x380   : > { %2602 = vrot.lane.b32.xlu0 %v3698_v23, %s4120_s29  ;;  %v3898_v23 = vld [vmem:[#allocation2 + $0x28] sm:$0xf0]  ;;  %p4060_p7 = pnand %p4059_p5, %p4055_p2 }
 0x383   : > { %2604 = vrot.lane.b32.xlu1 %v3702_v62, %s4120_s29  ;;  %v3654_v62 = vor.u32 %v3898_v23, %v3653_v26  ;;  %v3925_v26 = vld [vmem:[#allocation2 + $0x20] sm:$0xf] }
 0x387   : > { %2811 = vrot.lane.b32.xlu2 %v3746_v5, %s4121_s23 }
 0x388   : > { %2813 = vrot.lane.b32.xlu0 %v3750_v22, %s4121_s23 }
 0x38b   : > { %2815 = vrot.lane.b32.xlu1 %v3754_v32, %s4121_s23 }
 0x38f   : > { %2931 = vrot.lane.b32.xlu2 %v3782_v35, %s4120_s29 }
 0x390   : > { %2786 = vrot.lane.b32.xlu0 %v4852_v4, %s4114_s26 }
 0x393   : > { %2809 = vrot.lane.b32.xlu1 %v3742_v1, %s4121_s23 }
 0x397   : > { %2925 = vrot.lane.b32.xlu2 %v3770_v25, %s4120_s29 }
 0x398   : > { %2927 = vrot.lane.b32.xlu0 %v3774_v63, %s4120_s29  ;;  %v3911_v63 = vld [vmem:[#allocation2 + $0x18] sm:$0xf] }
 0x399   : > { %v3734_v49 = vor.u32 %v3911_v63, %v3731_v33 }
 0x39b   : > { %2929 = vrot.lane.b32.xlu1 %v3778_v20, %s4120_s29  ;;  %v3730_v20 = vor.u32 %v3913_v38, %v3729_v46 }
 0x39f   : > { %3141 = vrot.lane.b32.xlu2 %v3826_v9, %s4121_s23  ;;  %v3912_v9 = vld [vmem:[#allocation2 + $0x30] sm:$0xf0] }
 0x3a0   : > { %2900 = vrot.lane.b32.xlu0 %v4852_v4, %s4115_s10 }
 0x3a3   : > { %2923 = vrot.lane.b32.xlu1 %v3766_v7, %s4120_s29 }
 0x3a7   : > { %3137 = vrot.lane.b32.xlu2 %v3818_v60, %s4121_s23  ;;  %v3722_v60 = vor.u32 %v3912_v9, %v3721_v27 }
 0x3a8   : > { %3012 = vrot.lane.b32.xlu0 %v4852_v4, %s4116_s21 }
 0x3ab   : > { %3139 = vrot.lane.b32.xlu1 %v3822_v44, %s4121_s23  ;;  %v3726_v44 = vor.u32 %v3910_v39, %v3723_v21 }
 0x3b0   : > { %3143 = vrot.lane.b32.xlu0 %v3830_v30, %s4121_s23 }
 0x3b1   : > { %v2492_v58 = vpop.permute.xlu2 %2491 }
 0x3b3   : > { %3135 = vrot.lane.b32.xlu1 %v3814_v12, %s4121_s23  ;;  %s3350_s23 = sshll.u32 %s4239_s19, 6 }
 0x3b4   : > { %s4987_s8 = scalar_lea.vmem [#allocation6], %s3350_s23 }
 0x3b5   : > { %s3269_s16 = sshll.u32 %s4987_s8, 4  ;;  %s3270_s16 = int_to_ptr.vmem [resolvable:$true] %s3269_s16 }
 0x3b8   : > { %2237 = vperm.xlu0 %4004, %v2233_v48  }
 0x3b9   : > { %v4905_v11 = vpop.permute.xlu2 %2464 }
 0x3bb   : > { %2242 = vperm.xlu1 %4005, %v2234_v54  }
 0x3c1   : > { %v2607_v3 = vpop.permute.xlu2 %2606 }
 0x3c9   : > { %v2288_v45 = vpop.permute.xlu1 %2287  ;;  %v2580_v57 = vpop.permute.xlu2 %2579 }
 0x3ca   : > { %v2286_v24 = vpop.permute.xlu0 %2285 }
 0x3cb   : > { %v2292_v53 = vsel %vm2289_vm5, %v2284_v10, %v2286_v24  ;;  %v2293_v50 = vsel %vm2289_vm5, %v2286_v24, %v2288_v45 }
 0x3cc   : > { %2336 = vmatpush.bf16.msra.mxu2 %v2292_v53  ;;  %2350 = vmatpush.bf16.msra.mxu3 %v2293_v50 }
 0x3cf   : > { %3649 = vmatmul.msk.bf16.vlgmr.msra.gmra.mxu2 %vm438_vm2, %v4852_v4  ;;  %3650 = vmatmul.msk.bf16.vlgmr.msra.gmra.mxu3 %vm438_vm2, %v4852_v4 }
 0x3d0   : > { %2429 = vmatpush.bf16.msrb.mxu2 %v3662_v15  ;;  %2443 = vmatpush.bf16.msrb.mxu3 %v3666_v61  ;;  %v3797_v15 = vld [vmem:[#allocation2 + $0x1c] sm:$0xf]  ;;  %v3927_v61 = vld [vmem:[#allocation2 + $0x40] sm:$0xf0] }
 0x3d1   : > { %v2370_v0 = vpop.permute.xlu1 %2369  ;;  %v2692_v34 = vpop.permute.xlu2 %2691  ;;  %v3798_v23 = vor.u32 %v3927_v61, %v3797_v15 }
 0x3d2   : > { %v2282_v47 = vpop.permute.xlu0 %2281 }
 0x3d3   : > { %v2290_v5 = vsel %vm2289_vm5, %v2280_v51, %v2282_v47  ;;  %v2291_v16 = vsel %vm2289_vm5, %v2282_v47, %v2284_v10  ;;  %v3789_v47 = vld [vmem:[#allocation2 + $0x14] sm:$0xf] }
 0x3d4   : > { %2308 = vmatpush.bf16.msra.mxu0 %v2290_v5  ;;  %2322 = vmatpush.bf16.msra.mxu1 %v2291_v16 }
 0x3d7   : > { %3647 = vmatmul.msk.bf16.vlgmr.msra.gmra.mxu0 %vm438_vm2, %v4852_v4  ;;  %3648 = vmatmul.msk.bf16.vlgmr.msra.gmra.mxu1 %vm438_vm2, %v4852_v4 }
 0x3d8   : > { %2401 = vmatpush.bf16.msrb.mxu0 %v3654_v62  ;;  %2415 = vmatpush.bf16.msrb.mxu1 %v3658_v59  ;;  %v3926_v62 = vld [vmem:[#allocation2 + $0x38] sm:$0xf0]  ;;  %v3791_v59 = vld [vmem:[#allocation2 + $0x3c] sm:$0xf0] }
 0x3d9   : > { %v2818_v17 = vpop.permute.xlu2 %2817  ;;  %v3790_v5 = vor.u32 %v3926_v62, %v3789_v47 }
 0x3da   : > { %v2494_v22 = vpop.permute.xlu0 %2493 }
 0x3db   : > { %v2500_v8 = vsel %vm2497_vm6, %v2492_v58, %v2494_v22 }
 0x3dc   : > { %2544 = vmatpush.bf16.msra.mxu2 %v2500_v8 }
 0x3dd   : > { %v2496_v32 = vpop.permute.xlu1 %2495 }
 0x3de   : > { %v2501_v43 = vsel %vm2497_vm6, %v2494_v22, %v2496_v32 }
 0x3df   : > { %2558 = vmatpush.bf16.msra.mxu3 %v2501_v43  ;;  %3669 = vmatmul.msk.bf16.vlgmr.msrb.gmra.mxu2 %vm438_vm2, %v2370_v0 }
 0x3e0   : > { %3670 = vmatmul.msk.bf16.vlgmr.msrb.gmra.mxu3 %vm438_vm2, %v2370_v0 }
 0x3e1   : > { %v2812_v14 = vpop.permute.xlu2 %2811 }
 0x3e2   : > { %v2488_v35 = vpop.permute.xlu0 %2487 }
 0x3e5   : > { %v2490_v52 = vpop.permute.xlu1 %2489 }
 0x3e6   : > { %v2498_v41 = vsel %vm2497_vm6, %v2488_v35, %v2490_v52  ;;  %v2499_v4 = vsel %vm2497_vm6, %v2490_v52, %v2492_v58 }
 0x3e7   : > { %2530 = vmatpush.bf16.msra.mxu1 %v2499_v4  ;;  %2516 = vmatpush.bf16.msra.mxu0 %v2498_v41  ;;  %v3809_v4 = vld [vmem:[%s5040_s5 + $0x4] sm:$0xf] }
 0x3e8   : > { %3667 = vmatmul.msk.bf16.vlgmr.msrb.gmra.mxu0 %vm438_vm2, %v2370_v0  ;;  %3668 = vmatmul.msk.bf16.vlgmr.msrb.gmra.mxu1 %vm438_vm2, %v2370_v0  ;;  %v3924_v0 = vld [vmem:[#allocation2 + $0x18] sm:$0xf] }
 0x3e9   : > { %v2932_v51 = vpop.permute.xlu2 %2931  ;;  %v3794_v16 = vor.u32 %v3924_v0, %v3791_v59 }
 0x3ea   : > { %v2609_v1 = vpop.permute.xlu0 %2608 }
 0x3eb   : > { %v2614_v55 = vsel %vm2289_vm5, %v2607_v3, %v2609_v1 }
 0x3ec   : > { %2658 = vmatpush.bf16.msrb.mxu2 %v2614_v55 }
 0x3ed   : > { %v2611_v6 = vpop.permute.xlu1 %2610 }
 0x3ee   : > { %v2615_v25 = vsel %vm2289_vm5, %v2609_v1, %v2611_v6  ;;  %v3933_v1 = vld [vmem:[%s5040_s5 + $0x8] sm:$0xf0] }
 0x3ef   : > { %2672 = vmatpush.bf16.msrb.mxu3 %v2615_v25  ;;  %3693 = vmatmul.msk.bf16.vlgmr.msra.gmra.mxu2 %vm438_vm2, %v4905_v11  ;;  %v3810_v55 = vor.u32 %v3933_v1, %v3809_v4 }
 0x3f0   : > { %3694 = vmatmul.msk.bf16.vlgmr.msra.gmra.mxu3 %vm438_vm2, %v4905_v11  ;;  %2751 = vmatpush.bf16.msra.mxu2 %v3730_v20 }
 0x3f1   : > { %v2926_v24 = vpop.permute.xlu2 %2925 }
 0x3f2   : > { %v2603_v13 = vpop.permute.xlu0 %2602 }
 0x3f3   : > { %2765 = vmatpush.bf16.msra.mxu3 %v3734_v49 }
 0x3f5   : > { %v2605_v40 = vpop.permute.xlu1 %2604 }
 0x3f6   : > { %v2612_v7 = vsel %vm2289_vm5, %v2603_v13, %v2605_v40  ;;  %v2613_v18 = vsel %vm2289_vm5, %v2605_v40, %v2607_v3 }
 0x3f7   : > { %2630 = vmatpush.bf16.msrb.mxu0 %v2612_v7  ;;  %2644 = vmatpush.bf16.msrb.mxu1 %v2613_v18 }
 0x3f8   : > { %3691 = vmatmul.msk.bf16.vlgmr.msra.gmra.mxu0 %vm438_vm2, %v4905_v11  ;;  %3692 = vmatmul.msk.bf16.vlgmr.msra.gmra.mxu1 %vm438_vm2, %v4905_v11  ;;  %v3799_v11 = vld [vmem:[#allocation2 + $0x44] sm:$0xf0] }
 0x3f9   : > { %v3802_v42 = vor.u32 %v3925_v26, %v3799_v11  ;;  %v3142_v22 = vpop.permute.xlu2 %3141 }
 0x3fa   : > { %v2814_v19 = vpop.permute.xlu0 %2813 }
 0x3fb   : > { %2723 = vmatpush.bf16.msra.mxu0 %v3722_v60  ;;  %2737 = vmatpush.bf16.msra.mxu1 %v3726_v44  ;;  %v2820_v54 = vsel %vm2497_vm6, %v2812_v14, %v2814_v19 }
 0x3fd   : > { %v2816_v36 = vpop.permute.xlu1 %2815 }
 0x3fe   : > { %v2821_v30 = vsel %vm2497_vm6, %v2814_v19, %v2816_v36  ;;  %v2822_v28 = vsel %vm2497_vm6, %v2816_v36, %v2818_v17 }
 0x3ff   : > { %3717 = vmatmul.msk.bf16.vlgmr.msrb.gmra.mxu2 %vm438_vm2, %v2580_v57 }
 0x400   : > { %3718 = vmatmul.msk.bf16.vlgmr.msrb.gmra.mxu3 %vm438_vm2, %v2580_v57  ;;  %2865 = vmatpush.bf16.msrb.mxu2 %v2821_v30 }
 0x401   : > { %2879 = vmatpush.bf16.msrb.mxu3 %v2822_v28  ;;  %v3138_v35 = vpop.permute.xlu2 %3137 }
 0x402   : > { %v2787_v10 = vpop.permute.xlu0 %2786 }
 0x405   : > { %v2810_v12 = vpop.permute.xlu1 %2809 }
 0x406   : > { %v2819_v48 = vsel %vm2497_vm6, %v2810_v12, %v2812_v14 }
 0x408   : > { %3715 = vmatmul.msk.bf16.vlgmr.msrb.gmra.mxu0 %vm438_vm2, %v2580_v57  ;;  %3716 = vmatmul.msk.bf16.vlgmr.msrb.gmra.mxu1 %vm438_vm2, %v2580_v57 }
 0x409   : > { %2851 = vmatpush.bf16.msrb.mxu1 %v2820_v54  ;;  %2837 = vmatpush.bf16.msrb.mxu0 %v2819_v48 }
 0x40a   : > { %v2928_v58 = vpop.permute.xlu0 %2927 }
 0x40b   : > { %v2934_v53 = vsel %vm2289_vm5, %v2926_v24, %v2928_v58 }
 0x40d   : > { %v2930_v2 = vpop.permute.xlu1 %2929 }
 0x40e   : > { %v2935_v56 = vsel %vm2289_vm5, %v2928_v58, %v2930_v2  ;;  %v2936_v45 = vsel %vm2289_vm5, %v2930_v2, %v2932_v51 }
 0x40f   : > { %3737 = vmatmul.msk.bf16.vlgmr.msra.gmra.mxu2 %vm438_vm2, %v2692_v34 }
 0x410   : > { %3738 = vmatmul.msk.bf16.vlgmr.msra.gmra.mxu3 %vm438_vm2, %v2692_v34  ;;  %2979 = vmatpush.bf16.msra.mxu2 %v2935_v56 }
 0x411   : > { %2993 = vmatpush.bf16.msra.mxu3 %v2936_v45 }
 0x412   : > { %v2901_v50 = vpop.permute.xlu0 %2900 }
 0x415   : > { %v2924_v37 = vpop.permute.xlu1 %2923 }
 0x416   : > { %v2933_v29 = vsel %vm2289_vm5, %v2924_v37, %v2926_v24 }
 0x418   : > { %3735 = vmatmul.msk.bf16.vlgmr.msra.gmra.mxu0 %vm438_vm2, %v2692_v34  ;;  %3736 = vmatmul.msk.bf16.vlgmr.msra.gmra.mxu1 %vm438_vm2, %v2692_v34 }
 0x419   : > { %2965 = vmatpush.bf16.msra.mxu1 %v2934_v53  ;;  %2951 = vmatpush.bf16.msra.mxu0 %v2933_v29 }
 0x41a   : > { %v3013_v31 = vpop.permute.xlu0 %3012 }
 0x41d   : > { %v3140_v3 = vpop.permute.xlu1 %3139 }
 0x41e   : > { %v3147_v32 = vsel %vm2497_vm6, %v3140_v3, %v3142_v22  ;;  %v3146_v52 = vsel %vm2497_vm6, %v3138_v35, %v3140_v3 }
 0x41f   : > { %3761 = vmatmul.msk.bf16.vlgmr.msrb.gmra.mxu2 %vm438_vm2, %v2787_v10 }
 0x420   : > { %3762 = vmatmul.msk.bf16.vlgmr.msrb.gmra.mxu3 %vm438_vm2, %v2787_v10  ;;  %3072 = vmatpush.bf16.msrb.mxu2 %v3798_v23 }
 0x421   : > { %3086 = vmatpush.bf16.msrb.mxu3 %v3802_v42 }
 0x422   : > { %v3144_v8 = vpop.permute.xlu0 %3143 }
 0x423   : > { %v3148_v43 = vsel %vm2497_vm6, %v3142_v22, %v3144_v8 }
 0x425   : > { %v3136_v57 = vpop.permute.xlu1 %3135 }
 0x426   : > { %v3145_v41 = vsel %vm2497_vm6, %v3136_v57, %v3138_v35 }
 0x428   : > { %3759 = vmatmul.msk.bf16.vlgmr.msrb.gmra.mxu0 %vm438_vm2, %v2787_v10  ;;  %3760 = vmatmul.msk.bf16.vlgmr.msrb.gmra.mxu1 %vm438_vm2, %v2787_v10 }
 0x429   : > { %3044 = vmatpush.bf16.msrb.mxu0 %v3790_v5  ;;  %3058 = vmatpush.bf16.msrb.mxu1 %v3794_v16 }
 0x42a   : > { %v2238_v49 = vpop.permute.xlu0 %2237 }
 0x42d   : > { %v2243_v36 = vpop.permute.xlu1 %2242 }
 0x42f   : > { %3785 = vmatmul.msk.bf16.vlgmr.msra.gmra.mxu2 %vm438_vm2, %v2901_v50 }
 0x430   : > { %3786 = vmatmul.msk.bf16.vlgmr.msra.gmra.mxu3 %vm438_vm2, %v2901_v50  ;;  %3191 = vmatpush.bf16.msra.mxu2 %v3147_v32 }
 0x431   : > { %3205 = vmatpush.bf16.msra.mxu3 %v3148_v43 }
 0x438   : > { %3783 = vmatmul.msk.bf16.vlgmr.msra.gmra.mxu0 %vm438_vm2, %v2901_v50  ;;  %3784 = vmatmul.msk.bf16.vlgmr.msra.gmra.mxu1 %vm438_vm2, %v2901_v50 }
 0x439   : > { %3163 = vmatpush.bf16.msra.mxu0 %v3145_v41  ;;  %3177 = vmatpush.bf16.msra.mxu1 %v3146_v52 }
 0x43f   : > { %3805 = vmatmul.msk.bf16.vlgmr.msrb.gmra.mxu2 %vm438_vm2, %v3013_v31 }
 0x440   : > { %3806 = vmatmul.msk.bf16.vlgmr.msrb.gmra.mxu3 %vm438_vm2, %v3013_v31 }
 0x448   : > { %3803 = vmatmul.msk.bf16.vlgmr.msrb.gmra.mxu0 %vm438_vm2, %v3013_v31  ;;  %3804 = vmatmul.msk.bf16.vlgmr.msrb.gmra.mxu1 %vm438_vm2, %v3013_v31 }
 0x44f   : > { %3833 = vmatmul.msk.bf16.vlgmr.msra.gmra.mxu2 %vm438_vm2, %v3810_v55 }
 0x450   : > { %3834 = vmatmul.msk.bf16.vlgmr.msra.gmra.mxu3 %vm438_vm2, %v3810_v55 }
 0x452   : > { %v2338_v38 = vpop.f32.mrf.mxu2  ;;  %v2352_v33 = vpop.f32.mrf.mxu3 }
 0x453   : > { %v2359_v13 = vadd.f32 %v2338_v38, %v2238_v49  ;;  %v2360_v9 = vadd.f32 %v2352_v33, %v2238_v49 }
 0x454   : > { %v2310_v34 = vpop.f32.mrf.mxu0  ;;  %v2324_v6 = vpop.f32.mrf.mxu1 }
 0x455   : > { %v2357_v7 = vadd.f32 %v2310_v34, %v2238_v49  ;;  %v2358_v18 = vadd.f32 %v2324_v6, %v2238_v49 }
 0x458   : > { %3831 = vmatmul.msk.bf16.vlgmr.msra.gmra.mxu0 %vm438_vm2, %v3810_v55  ;;  %3832 = vmatmul.msk.bf16.vlgmr.msra.gmra.mxu1 %vm438_vm2, %v3810_v55 }
 0x45a   : > { %v2340_v25 = vpop.f32.mrf.mxu2  ;;  %v2354_v46 = vpop.f32.mrf.mxu3 }
 0x45b   : > { %v2363_v30 = vadd.f32 %v2340_v25, %v2243_v36  ;;  %v2364_v28 = vadd.f32 %v2354_v46, %v2243_v36 }
 0x45c   : > { %v2312_v63 = vpop.f32.mrf.mxu0  ;;  %v2326_v20 = vpop.f32.mrf.mxu1 }
 0x45d   : > { %v2361_v12 = vadd.f32 %v2312_v63, %v2243_v36  ;;  %v2362_v48 = vadd.f32 %v2326_v20, %v2243_v36 }
 0x462   : > { %v2431_v21 = vpop.f32.mrf.mxu2 }
 0x463   : > { %v2445_v40 = vpop.f32.mrf.mxu3  ;;  %v2452_v27 = vadd.f32 %v2431_v21, %v2359_v13 }
 0x464   : > { %v2453_v39 = vadd.f32 %v2445_v40, %v2360_v9 }
 0x465   : > { %v2403_v17 = vpop.f32.mrf.mxu0  ;;  %v2417_v60 = vpop.f32.mrf.mxu1 }
 0x466   : > { %v2450_v44 = vadd.f32 %v2403_v17, %v2357_v7  ;;  %v2451_v19 = vadd.f32 %v2417_v60, %v2358_v18 }
 0x46a   : > { %v2433_v14 = vpop.f32.mrf.mxu2 }
 0x46b   : > { %v2447_v10 = vpop.f32.mrf.mxu3  ;;  %v2456_v54 = vadd.f32 %v2433_v14, %v2363_v30 }
 0x46c   : > { %v2457_v51 = vadd.f32 %v2447_v10, %v2364_v28 }
 0x46d   : > { %v2405_v58 = vpop.f32.mrf.mxu0  ;;  %v2419_v2 = vpop.f32.mrf.mxu1 }
 0x46e   : > { %v2454_v56 = vadd.f32 %v2405_v58, %v2361_v12  ;;  %v2455_v45 = vadd.f32 %v2419_v2, %v2362_v48 }
 0x472   : > { %v2546_v24 = vpop.f32.mrf.mxu2 }
 0x473   : > { %v2560_v37 = vpop.f32.mrf.mxu3  ;;  %v2567_v29 = vadd.f32 %v2546_v24, %v2452_v27 }
 0x474   : > { %v2568_v53 = vadd.f32 %v2560_v37, %v2453_v39 }
 0x475   : > { %v2518_v50 = vpop.f32.mrf.mxu0  ;;  %v2532_v15 = vpop.f32.mrf.mxu1 }
 0x476   : > { %v2565_v61 = vadd.f32 %v2518_v50, %v2450_v44  ;;  %v2566_v26 = vadd.f32 %v2532_v15, %v2451_v19 }
 0x47a   : > { %v2548_v11 = vpop.f32.mrf.mxu2 }
 0x47b   : > { %v2562_v23 = vpop.f32.mrf.mxu3  ;;  %v2571_v42 = vadd.f32 %v2548_v11, %v2456_v54 }
 0x47c   : > { %v2572_v31 = vadd.f32 %v2562_v23, %v2457_v51 }
 0x47d   : > { %v2520_v62 = vpop.f32.mrf.mxu0  ;;  %v2534_v59 = vpop.f32.mrf.mxu1 }
 0x47e   : > { %v2569_v47 = vadd.f32 %v2520_v62, %v2454_v56  ;;  %v2570_v0 = vadd.f32 %v2534_v59, %v2455_v45 }
 0x482   : > { %v2660_v5 = vpop.f32.mrf.mxu2 }
 0x483   : > { %v2674_v16 = vpop.f32.mrf.mxu3  ;;  %v2681_v3 = vadd.f32 %v2660_v5, %v2567_v29 }
 0x484   : > { %v2682_v22 = vadd.f32 %v2674_v16, %v2568_v53  ;;  %v3220_v16 = vld [vmem:[%s4243_s22 + $0xc] sm:$0xff] }
 0x485   : > { %v2632_v8 = vpop.f32.mrf.mxu0  ;;  %v2646_v32 = vpop.f32.mrf.mxu1 }
 0x486   : > { %v2679_v43 = vadd.f32 %v2632_v8, %v2565_v61  ;;  %v2680_v57 = vadd.f32 %v2646_v32, %v2566_v26 }
 0x48a   : > { %v2662_v35 = vpop.f32.mrf.mxu2 }
 0x48b   : > { %v2676_v52 = vpop.f32.mrf.mxu3  ;;  %v2685_v41 = vadd.f32 %v2662_v35, %v2571_v42  ;;  %v3221_v42 = vld [vmem:[%s4243_s22 + $0x14] sm:$0xff] }
 0x48c   : > { %v2686_v4 = vadd.f32 %v2676_v52, %v2572_v31  ;;  %v3226_v32 = vunpack.c.l.bf16 %v3221_v42 }
 0x48d   : > { %v2634_v1 = vpop.f32.mrf.mxu0  ;;  %v2648_v55 = vpop.f32.mrf.mxu1 }
 0x48e   : > { %v2683_v38 = vadd.f32 %v2634_v1, %v2569_v47  ;;  %v2684_v33 = vadd.f32 %v2648_v55, %v2570_v0 }
 0x492   : > { %v2753_v34 = vpop.f32.mrf.mxu2 }
 0x493   : > { %v2767_v6 = vpop.f32.mrf.mxu3  ;;  %v2774_v56 = vadd.f32 %v2753_v34, %v2681_v3 }
 0x494   : > { %v2775_v45 = vadd.f32 %v2767_v6, %v2682_v22 }
 0x495   : > { %v2725_v25 = vpop.f32.mrf.mxu0  ;;  %v2739_v46 = vpop.f32.mrf.mxu1 }
 0x496   : > { %v2772_v29 = vadd.f32 %v2725_v25, %v2679_v43  ;;  %v2773_v53 = vadd.f32 %v2739_v46, %v2680_v57  ;;  %v3227_v57 = vunpack.c.h.bf16 %v3221_v42  ;;  %v3225_v46 = vunpack.c.h.bf16 %v3220_v16 }
 0x49a   : > { %v2755_v63 = vpop.f32.mrf.mxu2 }
 0x49b   : > { %v2769_v20 = vpop.f32.mrf.mxu3  ;;  %v2778_v31 = vadd.f32 %v2755_v63, %v2685_v41 }
 0x49c   : > { %v2779_v62 = vadd.f32 %v2769_v20, %v2686_v4  ;;  %v3224_v4 = vunpack.c.l.bf16 %v3220_v16 }
 0x49d   : > { %v2727_v49 = vpop.f32.mrf.mxu0  ;;  %v2741_v13 = vpop.f32.mrf.mxu1 }
 0x49e   : > { %v2776_v3 = vadd.f32 %v2727_v49, %v2683_v38  ;;  %v2777_v22 = vadd.f32 %v2741_v13, %v2684_v33 }
 0x4a2   : > { %v2867_v9 = vpop.f32.mrf.mxu2 }
 0x4a3   : > { %v2881_v21 = vpop.f32.mrf.mxu3  ;;  %v2888_v50 = vadd.f32 %v2867_v9, %v2774_v56 }
 0x4a4   : > { %v2889_v15 = vadd.f32 %v2881_v21, %v2775_v45 }
 0x4a5   : > { %v2839_v40 = vpop.f32.mrf.mxu0  ;;  %v2853_v7 = vpop.f32.mrf.mxu1 }
 0x4a6   : > { %v2886_v61 = vadd.f32 %v2839_v40, %v2772_v29  ;;  %v2887_v26 = vadd.f32 %v2853_v7, %v2773_v53 }
 0x4aa   : > { %v2869_v18 = vpop.f32.mrf.mxu2 }
 0x4ab   : > { %v2883_v27 = vpop.f32.mrf.mxu3  ;;  %v2892_v34 = vadd.f32 %v2869_v18, %v2778_v31 }
 0x4ac   : > { %v2893_v6 = vadd.f32 %v2883_v27, %v2779_v62  ;;  %v3223_v27 = vld [vmem:[%s4243_s22 + $0x3c] sm:$0xff] }
 0x4ad   : > { %v2841_v39 = vpop.f32.mrf.mxu0  ;;  %v2855_v17 = vpop.f32.mrf.mxu1 }
 0x4ae   : > { %v2890_v49 = vadd.f32 %v2841_v39, %v2776_v3  ;;  %v2891_v13 = vadd.f32 %v2855_v17, %v2777_v22 }
 0x4b2   : > { %v2981_v60 = vpop.f32.mrf.mxu2 }
 0x4b3   : > { %v2995_v44 = vpop.f32.mrf.mxu3  ;;  %v3002_v11 = vadd.f32 %v2981_v60, %v2888_v50 }
 0x4b4   : > { %v3003_v23 = vadd.f32 %v2995_v44, %v2889_v15 }
 0x4b5   : > { %v2953_v19 = vpop.f32.mrf.mxu0  ;;  %v2967_v36 = vpop.f32.mrf.mxu1 }
 0x4b6   : > { %v3000_v59 = vadd.f32 %v2953_v19, %v2886_v61  ;;  %v3001_v47 = vadd.f32 %v2967_v36, %v2887_v26 }
 0x4ba   : > { %v2983_v30 = vpop.f32.mrf.mxu2 }
 0x4bb   : > { %v2997_v28 = vpop.f32.mrf.mxu3  ;;  %v3006_v9 = vadd.f32 %v2983_v30, %v2892_v34  ;;  %v3222_v30 = vld [vmem:[%s4243_s22 + $0x34] sm:$0xff] }
 0x4bc   : > { %v3007_v21 = vadd.f32 %v2997_v28, %v2893_v6  ;;  %v3228_v45 = vunpack.c.l.bf16 %v3222_v30  ;;  %v3229_v53 = vunpack.c.h.bf16 %v3222_v30 }
 0x4bd   : > { %v2955_v14 = vpop.f32.mrf.mxu0  ;;  %v2969_v10 = vpop.f32.mrf.mxu1 }
 0x4be   : > { %v3004_v44 = vadd.f32 %v2955_v14, %v2890_v49  ;;  %v3005_v19 = vadd.f32 %v2969_v10, %v2891_v13 }
 0x4c2   : > { %v3074_v12 = vpop.f32.mrf.mxu2 }
 0x4c3   : > { %v3088_v48 = vpop.f32.mrf.mxu3  ;;  %v3095_v0 = vadd.f32 %v3074_v12, %v3002_v11 }
 0x4c4   : > { %v3096_v5 = vadd.f32 %v3088_v48, %v3003_v23  ;;  %v3230_v48 = vunpack.c.l.bf16 %v3223_v27 }
 0x4c5   : > { %v3046_v54 = vpop.f32.mrf.mxu0  ;;  %v3060_v51 = vpop.f32.mrf.mxu1 }
 0x4c6   : > { %v3093_v35 = vadd.f32 %v3046_v54, %v3000_v59  ;;  %v3094_v52 = vadd.f32 %v3060_v51, %v3001_v47  ;;  %v3231_v51 = vunpack.c.h.bf16 %v3223_v27 }
 0x4ca   : > { %v3076_v58 = vpop.f32.mrf.mxu2 }
 0x4cb   : > { %v3090_v2 = vpop.f32.mrf.mxu3  ;;  %v3099_v36 = vadd.f32 %v3076_v58, %v3006_v9 }
 0x4cc   : > { %v3100_v12 = vadd.f32 %v3090_v2, %v3007_v21 }
 0x4cd   : > { %v4979_v24 = vpop.f32.mrf.mxu0  ;;  %v4981_v37 = vpop.f32.mrf.mxu1 }
 0x4ce   : > { %v3097_v14 = vadd.f32 %v4979_v24, %v3004_v44  ;;  %v3098_v10 = vadd.f32 %v4981_v37, %v3005_v19 }
 0x4d2   : > { %v3193_v8 = vpop.f32.mrf.mxu2 }
 0x4d3   : > { %v3207_v43 = vpop.f32.mrf.mxu3  ;;  %v3214_v1 = vadd.f32 %v3193_v8, %v3095_v0 }
 0x4d4   : > { %v3215_v55 = vadd.f32 %v3207_v43, %v3096_v5 }
 0x4d5   : > { %v3165_v41 = vpop.f32.mrf.mxu0  ;;  %v3179_v25 = vpop.f32.mrf.mxu1  ;;  %v3234_v63 = vmax.f32 %v3214_v1, 0.0 }
 0x4d6   : > { %v3235_v20 = vmax.f32 %v3215_v55, 0.0  ;;  %v3212_v38 = vadd.f32 %v3165_v41, %v3093_v35  ;;  %v3213_v33 = vadd.f32 %v3179_v25, %v3094_v52 }
 0x4d7   : > { %v3242_v40 = vadd.f32 %v3234_v63, %v3226_v32 }
 0x4d8   : > { %v3243_v7 = vadd.f32 %v3235_v20, %v3227_v57  ;;  %v3232_v60 = vmax.f32 %v3212_v38, 0.0  ;;  %v3233_v18 = vmax.f32 %v3213_v33, 0.0 }
 0x4d9   : > { %3250 = vst [vmem:[%s4987_s8 + $0x10] sm:$0xff] %v3242_v40 }
 0x4da   : > { %v3240_v39 = vadd.f32 %v3232_v60, %v3224_v4  ;;  %v3241_v17 = vadd.f32 %v3233_v18, %v3225_v46  ;;  %3251 = vst [vmem:[%s4987_s8 + $0x18] sm:$0xff] %v3243_v7  ;;  %v3195_v28 = vpop.f32.mrf.mxu2 }
 0x4db   : > { %v3209_v54 = vpop.f32.mrf.mxu3  ;;  %v3218_v58 = vadd.f32 %v3195_v28, %v3099_v36 }
 0x4dc   : > { %3248 = vst [vmem:[%s4987_s8] sm:$0xff] %v3240_v39  ;;  %v3219_v2 = vadd.f32 %v3209_v54, %v3100_v12 }
 0x4dd   : > { %3249 = vst [vmem:[%s4987_s8 + $0x8] sm:$0xff] %v3241_v17  ;;  %v3167_v56 = vpop.f32.mrf.mxu0  ;;  %v3181_v29 = vpop.f32.mrf.mxu1  ;;  %v3238_v50 = vmax.f32 %v3218_v58, 0.0 }
 0x4de   : > { %v3239_v15 = vmax.f32 %v3219_v2, 0.0  ;;  %v3216_v24 = vadd.f32 %v3167_v56, %v3097_v14  ;;  %v3217_v37 = vadd.f32 %v3181_v29, %v3098_v10 }
 0x4df   : > { %v3246_v61 = vadd.f32 %v3238_v50, %v3230_v48 }
 0x4e0   : > { %v3247_v26 = vadd.f32 %v3239_v15, %v3231_v51  ;;  %v3236_v11 = vmax.f32 %v3216_v24, 0.0  ;;  %v3237_v23 = vmax.f32 %v3217_v37, 0.0 }
 0x4e1   : > { %3254 = vst [vmem:[%s4987_s8 + $0x30] sm:$0xff] %v3246_v61 }
 0x4e2   : > { %v3244_v42 = vadd.f32 %v3236_v11, %v3228_v45  ;;  %v3245_v31 = vadd.f32 %v3237_v23, %v3229_v53  ;;  %3255 = vst [vmem:[%s4987_s8 + $0x38] sm:$0xff] %v3247_v26 }
 0x4e4   : > { %3252 = vst [vmem:[%s4987_s8 + $0x20] sm:$0xff] %v3244_v42 }
 0x4e5   : > { %3253 = vst [vmem:[%s4987_s8 + $0x28] sm:$0xff] %v3245_v31 }
 0x4e6   : > { %4063 = shalt.err (!%p4060_p7)
}
 0x4e7   : > { %s4122_s19 = smov 512  }
 0x4e8   : > { %3940 = dma.vmem_to_hbm [thread:$0]  (%p4209_p11), %s3270_s16, 1024, %s3272_s20, %s3257_s9, %s4122_s19, %s4122_s19, %s4115_s10  }
 0x4e9 PF: > { %s3286_s8 = sand.u32 1, %s4090_s24   ;;  %p3947_p8 = pnand %p3347_p9, %p4213_p12 }
 0x4ea   : > { %s3287_s15 = scalar_lea.sflag [#allocation5], %s3286_s8 }
 0x4eb   : > { %p3948_p10 = pneg %p3947_p8 }
 0x4ed   : > { %4085 = dma.done.wait (%p3948_p10), %s3287_s15, 1024  }
 0x4ee   : > { %4087 = vsyncadd (%p3948_p10), %s3287_s15, 4294966272  ;;  %s5075_s28 = sld [smem:[#allocation9_spill]]  ;;  %p20_p0 = scmp.ge.s32.totalorder %s4188_s30, 4  }
 0x4ef   : > { %s5076_s26 = sld [smem:[#allocation10_spill]]  ;;  %s5077_s24 = smov %s4094_s25 }
 0x4f0   : > { %s5079_s27 = smov %s4188_s30  ;;  %22 = sbr.rel (!%p20_p0) target bundleno = 5 (0x5), region = 93 }
 0x4f4   : > { %s5078_s25 = smov %s5075_s28 }
 0x4f5   :  { %3293 = vsyncpa [#allocation4], 1 }
 0x4f6   :  { %3295 = vsyncpa [#allocation4 + $0x1], 1 }
 0x4f7   :  { %3296 = vsyncpa [#allocation5], 1 }
 0x4f8   :  { %3298 = vsyncpa [#allocation5 + $0x1], 1 }

</bundles_post_ra>
